<compile_context>
chip_gen: v5e
topology: v5e:2x2
jax: 0.10.0
libtpu: 0.0.40
codegen_flags: <defaults>
</compile_context>

<pallas_src>
import jax
import jax.numpy as jnp
from jax.experimental import pallas as pl
from jax.experimental.pallas import tpu as pltpu


def _round_up(x, m):
    return ((x + m - 1) // m) * m


def _device_defaults():
    """Per-TPU-generation (batch tile, scoped VMEM limit, #TensorCores) defaults."""
    kind = ""
    try:
        kind = (jax.devices()[0].device_kind or "").lower()
    except Exception:
        pass
    if "v7" in kind:
        # 64 MiB physical VMEM per TensorCore, 2 TCs per chip.
        return {"block_rows": 4096, "vmem_limit_bytes": 48 * 1024 * 1024,
                "two_cores": True}
    if "v6" in kind or "v5" in kind:
        # 128 MiB physical VMEM; the scoped default (16/32 MiB) is the binding
        # constraint, so raise it and use bigger tiles.
        return {"block_rows": 8192, "vmem_limit_bytes": 64 * 1024 * 1024,
                "two_cores": False}
    # Unknown generation / interpret mode: conservative.
    return {"block_rows": 2048, "vmem_limit_bytes": 32 * 1024 * 1024,
            "two_cores": False}


def _cap_rows_for_vmem(block_rows, d, h, o, x_itemsize, vmem_limit_bytes):
    """Cap the batch tile so lane-padded VMEM buffers fit the scoped limit."""
    lane = 128
    d_pad = _round_up(max(d, 1), lane)
    h_pad = _round_up(max(h, 1), lane)
    o_pad = _round_up(max(o, 1), lane)
    # Per-batch-row VMEM bytes (lane-padded): 2 double-buffered x tiles, the
    # f32 hidden activations (+ a possible transposed copy for layer 2), and
    # the output tile.  Keep ~50% of the scoped limit as headroom for weights,
    # output double-buffering and compiler scratch.
    per_row = 2 * d_pad * x_itemsize + 2 * h_pad * 4 + o_pad * 4
    budget = vmem_limit_bytes // 2
    max_rows = max(lane, (budget // per_row) // lane * lane)
    return int(min(block_rows, max_rows))


def _vnet_kernel_o1(x_ref, w1_ref, b1_ref, w2r_ref, b2_ref, out_ref):
    """output_size == 1 path; writes a lane-dense (1, TB) output row."""
    # Layer 1 on the MXU (f32 accumulate); bias add + ReLU on the VPU.
    h = jnp.dot(x_ref[...], w1_ref[...], preferred_element_type=jnp.float32)
    h = jnp.maximum(h + b1_ref[...], 0.0)                       # (TB, H) f32
    # Layer 2: contract H of h against the single w2 row with the batch dim
    # landing on lanes (flash-attention q@k^T dimension numbers).  The result
    # is (1, TB): a few unmasked lane-dense stores instead of TB/8 masked
    # column stores from a (TB, 1) layout.
    w2_row = w2r_ref[...].astype(jnp.float32)                   # (1, H)
    o = jax.lax.dot_general(
        w2_row, h,
        dimension_numbers=(((1,), (1,)), ((), ())),
        preferred_element_type=jnp.float32)                     # (1, TB)
    o = o + b2_ref[0]                                           # scalar bias (SMEM)
    out_ref[...] = jax.nn.sigmoid(o).astype(out_ref.dtype)


def _vnet_kernel_general(x_ref, w1_ref, b1_ref, w2_ref, b2_ref, out_ref):
    """General output_size path: both layers on the MXU, (TB, O) output."""
    h = jnp.dot(x_ref[...], w1_ref[...], preferred_element_type=jnp.float32)
    h = jnp.maximum(h + b1_ref[...], 0.0)
    o = jnp.dot(h, w2_ref[...].astype(jnp.float32),
                preferred_element_type=jnp.float32)
    out_ref[...] = jax.nn.sigmoid(o + b2_ref[...]).astype(out_ref.dtype)


def vnet_forward(x, w1, b1, w2, b2, *, block_rows=None, vmem_limit_bytes=None,
                 x_buffer_count=2):
    """VNet forward pass.

    x : (B, D)  activations; f32 or (recommended at large B) bf16
    w1: (D, H)  linear1 weight (pre-transposed from torch's (H, D))
    b1: (H,)
    w2: (H, O)  linear2 weight (pre-transposed from torch's (O, H))
    b2: (O,)
    Returns (B, O) in x.dtype.  bf16 output loses precision near 0/1; keep f32
    x (or cast the result) if the consumer divides by these weights.
    """
    B, D = x.shape
    H = w1.shape[1]
    O = w2.shape[1]

    cfg = _device_defaults()
    if block_rows is None:
        block_rows = cfg["block_rows"]
    if vmem_limit_bytes is None:
        vmem_limit_bytes = cfg["vmem_limit_bytes"]

    # Batch tile: multiple of 128 (lane-dense output path), sized to amortize
    # the per-grid-step overhead while fitting the lane-padded VMEM budget.
    tb = _cap_rows_for_vmem(block_rows, D, H, O, x.dtype.itemsize,
                            vmem_limit_bytes)
    tb = min(tb, _round_up(B, 128))
    if cfg["two_cores"] and B > 256:
        # Guarantee >= 2 grid steps so both v7x TensorCores get work.
        tb = min(tb, _round_up(pl.cdiv(B, 2), 128))
    tb = max(128, _round_up(tb, 128))

    num_blocks = pl.cdiv(B, tb)
    grid = (num_blocks,)
    out_dtype = x.dtype
    b1_2d = b1.reshape(1, H).astype(jnp.float32)

    # x / out tiles move with the grid; weights & biases have constant index
    # maps so they stay VMEM-resident across all batch tiles.
    x_kwargs = {}
    if x_buffer_count != 2:
        x_kwargs["pipeline_mode"] = pl.Buffered(x_buffer_count)
    x_spec = pl.BlockSpec((tb, D), lambda i: (i, 0), **x_kwargs)
    w1_spec = pl.BlockSpec((D, H), lambda i: (0, 0))
    b1_spec = pl.BlockSpec((1, H), lambda i: (0, 0))

    compiler_params = pltpu.CompilerParams(
        # TODO(synk): if "parallel" does not actually shard the batch axis
        # across v7x's two TensorCores, switch to pltpu.CORE_PARALLEL here.
        dimension_semantics=("parallel",),
        vmem_limit_bytes=vmem_limit_bytes,
    )

    if O == 1:
        # Lane-dense output slab (1, num_blocks*tb); reshaped to (B, 1) below.
        w2_row = w2.reshape(1, H)
        b2_s = b2.reshape(1).astype(jnp.float32)
        out = pl.pallas_call(
            _vnet_kernel_o1,
            out_shape=jax.ShapeDtypeStruct((1, num_blocks * tb), out_dtype),
            grid=grid,
            in_specs=[
                x_spec, w1_spec, b1_spec,
                pl.BlockSpec((1, H), lambda i: (0, 0)),              # w2 row, resident
                pl.BlockSpec(memory_space=pltpu.MemorySpace.SMEM),   # b2 scalar
            ],
            out_specs=pl.BlockSpec((1, tb), lambda i: (0, i)),
            compiler_params=compiler_params,
        )(x, w1, b1_2d, w2_row, b2_s)
        return out[0, :B].reshape(B, 1)

    # General O > 1 path: (B, O) output, final partial block masked by Pallas.
    b2_2d = b2.reshape(1, O).astype(jnp.float32)
    out = pl.pallas_call(
        _vnet_kernel_general,
        out_shape=jax.ShapeDtypeStruct((B, O), out_dtype),
        grid=grid,
        in_specs=[
            x_spec, w1_spec, b1_spec,
            pl.BlockSpec((H, O), lambda i: (0, 0)),
            pl.BlockSpec((1, O), lambda i: (0, 0)),
        ],
        out_specs=pl.BlockSpec((tb, O), lambda i: (i, 0)),
        compiler_params=compiler_params,
    )(x, w1, b1_2d, w2, b2_2d)
    return out


def _ref_forward(x, w1, b1, w2, b2):
    h = jnp.maximum(jnp.dot(x, w1) + b1, 0.0)
    return jax.nn.sigmoid(jnp.dot(h, w2) + b2)


if __name__ == "__main__":
    # Shapes consistent with VNet(input_size, hidden_size, output_size=1),
    # with a batch large enough to exercise the batch-tiled pipeline.
    batch, input_size, hidden_size, output_size = 1024, 32, 64, 1

    key = jax.random.PRNGKey(0)
    kx, k1, k2, k3, k4 = jax.random.split(key, 5)

    x = jax.random.normal(kx, (batch, input_size), dtype=jnp.float32)

    # PyTorch-style uniform(-1/sqrt(fan_in), +1/sqrt(fan_in)) init.
    bound1 = 1.0 / (input_size ** 0.5)
    w1 = jax.random.uniform(k1, (input_size, hidden_size),
                            minval=-bound1, maxval=bound1, dtype=jnp.float32)
    b1 = jax.random.uniform(k2, (hidden_size,),
                            minval=-bound1, maxval=bound1, dtype=jnp.float32)
    bound2 = 1.0 / (hidden_size ** 0.5)
    w2 = jax.random.uniform(k3, (hidden_size, output_size),
                            minval=-bound2, maxval=bound2, dtype=jnp.float32)
    b2 = jax.random.uniform(k4, (output_size,),
                            minval=-bound2, maxval=bound2, dtype=jnp.float32)

    ref = _ref_forward(x, w1, b1, w2, b2)

    # f32, auto-sized tile (likely a single or dual grid step at this B).
    out = jax.block_until_ready(vnet_forward(x, w1, b1, w2, b2))
    assert out.shape == (batch, output_size)
    assert jnp.allclose(out, ref, atol=1e-4, rtol=1e-4), "f32 mismatch vs reference"

    # Force a multi-step grid (exercises tile streaming + lane-dense out map).
    out_tiled = jax.block_until_ready(
        vnet_forward(x, w1, b1, w2, b2, block_rows=256))
    assert jnp.allclose(out_tiled, ref, atol=1e-4, rtol=1e-4), "tiled mismatch"

    # Ragged batch (exercises the no-pad cdiv grid / partial final block).
    out_r = jax.block_until_ready(vnet_forward(x[:777], w1, b1, w2, b2))
    assert out_r.shape == (777, output_size)
    assert jnp.allclose(out_r, ref[:777], atol=1e-4, rtol=1e-4), "ragged mismatch"

    # bf16 activations/weights (bandwidth-saving path); f32 accumulate inside.
    out_bf = jax.block_until_ready(
        vnet_forward(x.astype(jnp.bfloat16), w1.astype(jnp.bfloat16), b1,
                     w2.astype(jnp.bfloat16), b2))
    assert out_bf.shape == (batch, output_size)
    assert jnp.allclose(out_bf.astype(jnp.float32), ref, atol=5e-2), "bf16 mismatch"

    # output_size > 1 falls back to the MXU matmul path with (B, O) output.
    k5, k6 = jax.random.split(k4)
    w2m = jax.random.uniform(k5, (hidden_size, 8),
                             minval=-bound2, maxval=bound2, dtype=jnp.float32)
    b2m = jax.random.uniform(k6, (8,),
                             minval=-bound2, maxval=bound2, dtype=jnp.float32)
    out_m = jax.block_until_ready(vnet_forward(x, w1, b1, w2m, b2m))
    assert jnp.allclose(out_m, _ref_forward(x, w1, b1, w2m, b2m),
                        atol=1e-4, rtol=1e-4), "O>1 mismatch"

    print("KERNEL_OK")
</pallas_src>

<mosaic_0001>
module attributes {stable_mosaic.version = 11 : i64} {
  func.func @_vnet_kernel_o1(%arg0: i32, %arg1: memref<1024x32xf32, #tpu.memory_space<vmem>>, %arg2: memref<32x64xf32, #tpu.memory_space<vmem>>, %arg3: memref<1x64xf32, #tpu.memory_space<vmem>>, %arg4: memref<1x64xf32, #tpu.memory_space<vmem>>, %arg5: memref<1xf32, #tpu.memory_space<smem>>, %arg6: memref<1x1024xf32, #tpu.memory_space<vmem>>) attributes {dimension_semantics = [#tpu.dimension_semantics<parallel>], iteration_bounds = array<i64: 1>, scalar_prefetch = 0 : i64, scratch_operands = 0 : i64, tpu.core_type = #tpu.core_type<tc>, window_params = [{transform_indices = @transform_0, window_bounds = array<i64: 1024, 32>}, {pipeline_mode = #tpu.pipeline_mode<synchronous>, transform_indices = @transform_1, window_bounds = array<i64: 32, 64>}, {pipeline_mode = #tpu.pipeline_mode<synchronous>, transform_indices = @transform_2, window_bounds = array<i64: 1, 64>}, {pipeline_mode = #tpu.pipeline_mode<synchronous>, transform_indices = @transform_3, window_bounds = array<i64: 1, 64>}, {transform_indices = @transform_4, window_bounds = array<i64: 1>}, {transform_indices = @transform_5, window_bounds = array<i64: 1, 1024>}]} {
    %c0 = arith.constant 0 : index
    %c0_0 = arith.constant 0 : index
    %0 = vector.load %arg1[%c0, %c0_0] : memref<1024x32xf32, #tpu.memory_space<vmem>>, vector<1024x32xf32>
    %c0_1 = arith.constant 0 : index
    %c0_2 = arith.constant 0 : index
    %1 = vector.load %arg2[%c0_1, %c0_2] : memref<32x64xf32, #tpu.memory_space<vmem>>, vector<32x64xf32>
    %cst = arith.constant dense<0.000000e+00> : vector<1024x64xf32>
    %2 = tpu.matmul %0, %1, %cst {dimension_numbers = #tpu.dot_dimension_numbers<[1], [0], [0], [1], [0, 0, 1, 1], [], []>} : vector<1024x32xf32>, vector<32x64xf32>, vector<1024x64xf32> -> vector<1024x64xf32>
    %c0_3 = arith.constant 0 : index
    %c0_4 = arith.constant 0 : index
    %3 = vector.load %arg3[%c0_3, %c0_4] : memref<1x64xf32, #tpu.memory_space<vmem>>, vector<1x64xf32>
    %4 = vector.broadcast %3 : vector<1x64xf32> to vector<1024x64xf32>
    %5 = arith.addf %2, %4 : vector<1024x64xf32>
    %cst_5 = arith.constant 0.000000e+00 : f32
    %6 = vector.broadcast %cst_5 : f32 to vector<1024x64xf32>
    %7 = arith.maximumf %5, %6 : vector<1024x64xf32>
    %c0_6 = arith.constant 0 : index
    %c0_7 = arith.constant 0 : index
    %8 = vector.load %arg4[%c0_6, %c0_7] : memref<1x64xf32, #tpu.memory_space<vmem>>, vector<1x64xf32>
    %cst_8 = arith.constant dense<0.000000e+00> : vector<1x1024xf32>
    %9 = tpu.matmul %8, %7, %cst_8 {dimension_numbers = #tpu.dot_dimension_numbers<[1], [1], [0], [0], [0, 0, 1, 0], [], []>} : vector<1x64xf32>, vector<1024x64xf32>, vector<1x1024xf32> -> vector<1x1024xf32>
    %c0_9 = arith.constant 0 : index
    %10 = memref.load %arg5[%c0_9] : memref<1xf32, #tpu.memory_space<smem>>
    %11 = vector.broadcast %10 : f32 to vector<1x1024xf32>
    %12 = arith.addf %9, %11 : vector<1x1024xf32>
    %13 = arith.negf %12 : vector<1x1024xf32>
    %14 = math.exp %13 : vector<1x1024xf32>
    %cst_10 = arith.constant 1.000000e+00 : f32
    %15 = vector.broadcast %cst_10 : f32 to vector<1x1024xf32>
    %16 = arith.addf %15, %14 : vector<1x1024xf32>
    %17 = arith.divf %15, %16 : vector<1x1024xf32>
    %c0_11 = arith.constant 0 : index
    %c0_12 = arith.constant 0 : index
    %18 = vector.load %arg6[%c0_11, %c0_12] : memref<1x1024xf32, #tpu.memory_space<vmem>>, vector<1x1024xf32>
    tpu.vector_store %arg6[%c0_11, %c0_12], %17 {strides = array<i32>} : memref<1x1024xf32, #tpu.memory_space<vmem>>, vector<1x1024xf32>,
    return
  }
  func.func @transform_0(%arg0: i32) -> (i32, i32) {
    %c0_i32 = arith.constant 0 : i32
    %c0_i32_0 = arith.constant 0 : i32
    return %arg0, %c0_i32 : i32, i32
  }
  func.func @transform_1(%arg0: i32) -> (i32, i32) {
    %c0_i32 = arith.constant 0 : i32
    %c0_i32_0 = arith.constant 0 : i32
    %c0_i32_1 = arith.constant 0 : i32
    return %c0_i32, %c0_i32_0 : i32, i32
  }
  func.func @transform_2(%arg0: i32) -> (i32, i32) {
    %c0_i32 = arith.constant 0 : i32
    %c0_i32_0 = arith.constant 0 : i32
    %c0_i32_1 = arith.constant 0 : i32
    return %c0_i32, %c0_i32_0 : i32, i32
  }
  func.func @transform_3(%arg0: i32) -> (i32, i32) {
    %c0_i32 = arith.constant 0 : i32
    %c0_i32_0 = arith.constant 0 : i32
    %c0_i32_1 = arith.constant 0 : i32
    return %c0_i32, %c0_i32_0 : i32, i32
  }
  func.func @transform_4(%arg0: i32) -> i32 {
    %c0_i32 = arith.constant 0 : i32
    %c0_i32_0 = arith.constant 0 : i32
    return %c0_i32 : i32
  }
  func.func @transform_5(%arg0: i32) -> (i32, i32) {
    %c0_i32 = arith.constant 0 : i32
    %c0_i32_0 = arith.constant 0 : i32
    return %c0_i32, %arg0 : i32, i32
  }
}

</mosaic_0001>

<bundles_post_ra>
// kernel: tpu_custom_call.1
= control target key start
LH: loop header
LB: loop body
LE: loop exit
PB: predicated region body
PF: predicated region fallthrough
CT: control target
= control target key end

     0   :  { %s3482_s0 = inlined_call_operand.vmem [shape: f32[1024,32], index: 0, kind: input, shape index: {}]   ;;  %s3483_s1 = inlined_call_operand.vmem [shape: f32[32,64], index: 1, kind: input, shape index: {}]   ;;  %s3484_s2 = inlined_call_operand.vmem [shape: f32[1,64], index: 2, kind: input, shape index: {}]   ;;  %s3485_s3 = inlined_call_operand.vmem [shape: f32[1,64], index: 3, kind: input, shape index: {}]   ;;  %s3486_s4 = inlined_call_operand.<no memory space> [shape: f32[1], index: 4, kind: input, shape index: {}]   ;;  %s3487_s5 = inlined_call_operand.hbm [shape: f32[1,1024], index: 5, kind: output, shape index: {}]  }
   0x1   :  { %v153_v0 = vld [vmem:[%s3483_s1 + $0x18] sm:$0xff]  ;;  %v152_v1 = vld [vmem:[%s3483_s1 + $0x10] sm:$0xff]  ;;  %v151_v2 = vld [vmem:[%s3483_s1 + $0x8] sm:$0xff] }
   0x2   :  { %555 = vmatpush.msra.mxu0 %v153_v0  ;;  %2094 = vmatpush.msra.mxu1 %v153_v0 }
   0x3   :  { %2096 = vmatpush.msra.mxu3 %v153_v0  ;;  %2095 = vmatpush.msra.mxu2 %v153_v0 }
   0x4   :  { %556 = vmatpush.msra.mxu0 %v152_v1  ;;  %2097 = vmatpush.msra.mxu1 %v152_v1 }
   0x5   :  { %11 = vsyncpa [#allocation4], 0  ;;  %v150_v3 = vld [vmem:[%s3483_s1] sm:$0xff]  ;;  %2099 = vmatpush.msra.mxu3 %v152_v1  ;;  %2098 = vmatpush.msra.mxu2 %v152_v1  ;;  %vm158_vm0 = vcmask 261120   ;;  %v23_v5 = vld [vmem:[%s3482_s0 + $0x8] sm:$0xff]  ;;  %vm1075_vm1 = vcmask 523264  }
   0x6   :  { %557 = vmatpush.msra.mxu0 %v151_v2  ;;  %v22_v4 = vld [vmem:[%s3482_s0] sm:$0xff]  ;;  %2100 = vmatpush.msra.mxu1 %v151_v2  ;;  %v24_v6 = vld [vmem:[%s3482_s0 + $0x10] sm:$0xff]  ;;  %v69_v7 = vld [vmem:[%s3482_s0 + $0x178] sm:$0xff] }
   0x7   :  { %2102 = vmatpush.msra.mxu3 %v151_v2  ;;  %2101 = vmatpush.msra.mxu2 %v151_v2  ;;  %v25_v8 = vld [vmem:[%s3482_s0 + $0x18] sm:$0xff]  ;;  %v70_v9 = vld [vmem:[%s3482_s0 + $0x180] sm:$0xff]  ;;  %v71_v11 = vld [vmem:[%s3482_s0 + $0x188] sm:$0xff] }
   0x8   :  { %558 = vmatpush.msra.mxu0 %v150_v3  ;;  %2103 = vmatpush.msra.mxu1 %v150_v3  ;;  %v26_v10 = vld [vmem:[%s3482_s0 + $0x20] sm:$0xff]  ;;  %v27_v12 = vld [vmem:[%s3482_s0 + $0x28] sm:$0xff]  ;;  %v72_v13 = vld [vmem:[%s3482_s0 + $0x190] sm:$0xff] }
   0x9   :  { %1822 = vmatmul.msk.f32.vlgmr.msra.gmra.mxu0 %vm158_vm0, %v22_v4  ;;  %2105 = vmatpush.msra.mxu3 %v150_v3  ;;  %v28_v14 = vld [vmem:[%s3482_s0 + $0x30] sm:$0xff]  ;;  %v114_v15 = vld [vmem:[%s3482_s0 + $0x2e0] sm:$0xff]  ;;  %v73_v16 = vld [vmem:[%s3482_s0 + $0x198] sm:$0xff] }
   0xa   :  { %2104 = vmatpush.msra.mxu2 %v150_v3  ;;  %1869 = vmatmul.msk.f32.vlgmr.msra.gmra.mxu1 %vm158_vm0, %v69_v7  ;;  %v29_v17 = vld [vmem:[%s3482_s0 + $0x38] sm:$0xff]  ;;  %v115_v18 = vld [vmem:[%s3482_s0 + $0x2e8] sm:$0xff]  ;;  %v74_v19 = vld [vmem:[%s3482_s0 + $0x1a0] sm:$0xff] }
   0xb   :  { %1914 = vmatmul.msk.f32.vlgmr.msra.gmra.mxu3 %vm158_vm0, %v114_v15  ;;  %v30_v20 = vld [vmem:[%s3482_s0 + $0x40] sm:$0xff]  ;;  %v116_v21 = vld [vmem:[%s3482_s0 + $0x2f0] sm:$0xff]  ;;  %v75_v22 = vld [vmem:[%s3482_s0 + $0x1a8] sm:$0xff] }
   0xc   :  { %v31_v23 = vld [vmem:[%s3482_s0 + $0x48] sm:$0xff]  ;;  %v117_v24 = vld [vmem:[%s3482_s0 + $0x2f8] sm:$0xff]  ;;  %v76_v25 = vld [vmem:[%s3482_s0 + $0x1b0] sm:$0xff] }
   0xd   :  { %v32_v26 = vld [vmem:[%s3482_s0 + $0x50] sm:$0xff]  ;;  %v118_v27 = vld [vmem:[%s3482_s0 + $0x300] sm:$0xff]  ;;  %v77_v28 = vld [vmem:[%s3482_s0 + $0x1b8] sm:$0xff] }
   0xe   :  { %v33_v29 = vld [vmem:[%s3482_s0 + $0x58] sm:$0xff]  ;;  %v119_v30 = vld [vmem:[%s3482_s0 + $0x308] sm:$0xff]  ;;  %v78_v31 = vld [vmem:[%s3482_s0 + $0x1c0] sm:$0xff] }
   0xf   :  { %v34_v32 = vld [vmem:[%s3482_s0 + $0x60] sm:$0xff]  ;;  %v120_v33 = vld [vmem:[%s3482_s0 + $0x310] sm:$0xff]  ;;  %v79_v34 = vld [vmem:[%s3482_s0 + $0x1c8] sm:$0xff] }
  0x10   :  { %v35_v35 = vld [vmem:[%s3482_s0 + $0x68] sm:$0xff]  ;;  %v121_v36 = vld [vmem:[%s3482_s0 + $0x318] sm:$0xff]  ;;  %v80_v37 = vld [vmem:[%s3482_s0 + $0x1d0] sm:$0xff] }
  0x11   :  { %1823 = vmatmul.msk.f32.gmra.mxu0 %vm158_vm0, %v23_v5  ;;  %v36_v38 = vld [vmem:[%s3482_s0 + $0x70] sm:$0xff]  ;;  %v122_v39 = vld [vmem:[%s3482_s0 + $0x320] sm:$0xff]  ;;  %v81_v40 = vld [vmem:[%s3482_s0 + $0x1d8] sm:$0xff] }
  0x12   :  { %1870 = vmatmul.msk.f32.gmra.mxu1 %vm158_vm0, %v70_v9  ;;  %v37_v41 = vld [vmem:[%s3482_s0 + $0x78] sm:$0xff]  ;;  %v123_v42 = vld [vmem:[%s3482_s0 + $0x328] sm:$0xff]  ;;  %v82_v43 = vld [vmem:[%s3482_s0 + $0x1e0] sm:$0xff] }
  0x13   :  { %1915 = vmatmul.msk.f32.gmra.mxu3 %vm158_vm0, %v115_v18  ;;  %v38_v45 = vld [vmem:[%s3482_s0 + $0x80] sm:$0xff]  ;;  %v124_v46 = vld [vmem:[%s3482_s0 + $0x330] sm:$0xff]  ;;  %v83_v47 = vld [vmem:[%s3482_s0 + $0x1e8] sm:$0xff] }
  0x14   :  { %v39_v49 = vld [vmem:[%s3482_s0 + $0x88] sm:$0xff]  ;;  %v125_v50 = vld [vmem:[%s3482_s0 + $0x338] sm:$0xff]  ;;  %v84_v51 = vld [vmem:[%s3482_s0 + $0x1f0] sm:$0xff] }
  0x15   :  { %v40_v53 = vld [vmem:[%s3482_s0 + $0x90] sm:$0xff]  ;;  %v126_v55 = vld [vmem:[%s3482_s0 + $0x340] sm:$0xff]  ;;  %v85_v56 = vld [vmem:[%s3482_s0 + $0x1f8] sm:$0xff] }
  0x16   :  { %v41_v58 = vld [vmem:[%s3482_s0 + $0x98] sm:$0xff]  ;;  %v127_v60 = vld [vmem:[%s3482_s0 + $0x348] sm:$0xff]  ;;  %v42_v62 = vld [vmem:[%s3482_s0 + $0xa0] sm:$0xff] }
  0x17   :  { %v128_v0 = vld [vmem:[%s3482_s0 + $0x350] sm:$0xff]  ;;  %v43_v2 = vld [vmem:[%s3482_s0 + $0xa8] sm:$0xff]  ;;  %v129_v4 = vld [vmem:[%s3482_s0 + $0x358] sm:$0xff] }
  0x18   :  { %v130_v7 = vld [vmem:[%s3482_s0 + $0x360] sm:$0xff] }
  0x19   :  { %1824 = vmatmul.msk.f32.gmra.mxu0 %vm158_vm0, %v24_v6  ;;  %v44_v6 = vld [vmem:[%s3482_s0 + $0xb0] sm:$0xff] }
  0x1a   :  { %1871 = vmatmul.msk.f32.gmra.mxu1 %vm158_vm0, %v71_v11 }
  0x1b   :  { %1916 = vmatmul.msk.f32.gmra.mxu3 %vm158_vm0, %v116_v21 }
  0x21   :  { %1825 = vmatmul.msk.f32.gmra.mxu0 %vm158_vm0, %v25_v8 }
  0x22   :  { %1872 = vmatmul.msk.f32.gmra.mxu1 %vm158_vm0, %v72_v13 }
  0x23   :  { %1917 = vmatmul.msk.f32.gmra.mxu3 %vm158_vm0, %v117_v24  ;;  %v48_v24 = vld [vmem:[%s3482_s0 + $0xd0] sm:$0xff] }
  0x29   :  { %1826 = vmatmul.msk.f32.gmra.mxu0 %vm158_vm0, %v26_v10  ;;  %v45_v10 = vld [vmem:[%s3482_s0 + $0xb8] sm:$0xff] }
  0x2a   :  { %1873 = vmatmul.msk.f32.gmra.mxu1 %vm158_vm0, %v73_v16 }
  0x2b   :  { %1918 = vmatmul.msk.f32.gmra.mxu3 %vm158_vm0, %v118_v27 }
  0x31   :  { %1827 = vmatmul.msk.f32.gmra.mxu0 %vm158_vm0, %v27_v12  ;;  %v131_v12 = vld [vmem:[%s3482_s0 + $0x368] sm:$0xff] }
  0x32   :  { %1874 = vmatmul.msk.f32.gmra.mxu1 %vm158_vm0, %v74_v19  ;;  %v47_v19 = vld [vmem:[%s3482_s0 + $0xc8] sm:$0xff] }
  0x33   :  { %1919 = vmatmul.msk.f32.gmra.mxu3 %vm158_vm0, %v119_v30 }
  0x39   :  { %1828 = vmatmul.msk.f32.gmra.mxu0 %vm158_vm0, %v28_v14  ;;  %v46_v14 = vld [vmem:[%s3482_s0 + $0xc0] sm:$0xff] }
  0x3a   :  { %1875 = vmatmul.msk.f32.gmra.mxu1 %vm158_vm0, %v75_v22  ;;  %v133_v22 = vld [vmem:[%s3482_s0 + $0x378] sm:$0xff] }
  0x3b   :  { %1920 = vmatmul.msk.f32.gmra.mxu3 %vm158_vm0, %v120_v33 }
  0x41   :  { %1829 = vmatmul.msk.f32.gmra.mxu0 %vm158_vm0, %v29_v17  ;;  %v132_v17 = vld [vmem:[%s3482_s0 + $0x370] sm:$0xff] }
  0x42   :  { %1876 = vmatmul.msk.f32.gmra.mxu1 %vm158_vm0, %v76_v25  ;;  %v2508_v25 = vld [vmem:[%s3484_s2] ss:$0 sm:$0xff] }
  0x43   :  { %1921 = vmatmul.msk.f32.gmra.mxu3 %vm158_vm0, %v121_v36 }
  0x49   :  { %1830 = vmatmul.msk.f32.gmra.mxu0 %vm158_vm0, %v30_v20 }
  0x4a   :  { %1877 = vmatmul.msk.f32.gmra.mxu1 %vm158_vm0, %v77_v28 }
  0x4b   :  { %1922 = vmatmul.msk.f32.gmra.mxu3 %vm158_vm0, %v122_v39 }
  0x51   :  { %1831 = vmatmul.msk.f32.gmra.mxu0 %vm158_vm0, %v31_v23 }
  0x52   :  { %1878 = vmatmul.msk.f32.gmra.mxu1 %vm158_vm0, %v78_v31 }
  0x53   :  { %1923 = vmatmul.msk.f32.gmra.mxu3 %vm158_vm0, %v123_v42  ;;  %v51_v42 = vld [vmem:[%s3482_s0 + $0xe8] sm:$0xff] }
  0x59   :  { %1832 = vmatmul.msk.f32.gmra.mxu0 %vm158_vm0, %v32_v26 }
  0x5a   :  { %1879 = vmatmul.msk.f32.gmra.mxu1 %vm158_vm0, %v79_v34  ;;  %v135_v34 = vld [vmem:[%s3482_s0 + $0x388] sm:$0xff] }
  0x5b   :  { %1924 = vmatmul.msk.f32.gmra.mxu3 %vm158_vm0, %v124_v46 }
  0x61   :  { %1833 = vmatmul.msk.f32.gmra.mxu0 %vm158_vm0, %v33_v29  ;;  %v134_v29 = vld [vmem:[%s3482_s0 + $0x380] sm:$0xff] }
  0x62   :  { %1880 = vmatmul.msk.f32.gmra.mxu1 %vm158_vm0, %v80_v37  ;;  %v50_v37 = vld [vmem:[%s3482_s0 + $0xe0] sm:$0xff] }
  0x63   :  { %1925 = vmatmul.msk.f32.gmra.mxu3 %vm158_vm0, %v125_v50  ;;  %v52_v50 = vld [vmem:[%s3482_s0 + $0xf0] sm:$0xff] }
  0x69   :  { %1834 = vmatmul.msk.f32.gmra.mxu0 %vm158_vm0, %v34_v32  ;;  %v49_v32 = vld [vmem:[%s3482_s0 + $0xd8] sm:$0xff] }
  0x6a   :  { %1881 = vmatmul.msk.f32.gmra.mxu1 %vm158_vm0, %v81_v40  ;;  %v136_v40 = vld [vmem:[%s3482_s0 + $0x390] sm:$0xff] }
  0x6b   :  { %1926 = vmatmul.msk.f32.gmra.mxu3 %vm158_vm0, %v126_v55  ;;  %v86_v55 = vld [vmem:[%s3482_s0 + $0x200] sm:$0xff] }
  0x71   :  { %1835 = vmatmul.msk.f32.gmra.mxu0 %vm158_vm0, %v35_v35 }
  0x72   :  { %1882 = vmatmul.msk.f32.gmra.mxu1 %vm158_vm0, %v82_v43 }
  0x73   :  { %1927 = vmatmul.msk.f32.gmra.mxu3 %vm158_vm0, %v127_v60  ;;  %v53_v60 = vld [vmem:[%s3482_s0 + $0xf8] sm:$0xff] }
  0x79   :  { %1836 = vmatmul.msk.f32.gmra.mxu0 %vm158_vm0, %v36_v38  ;;  %v95_v38 = vld [vmem:[%s3482_s0 + $0x248] sm:$0xff] }
  0x7a   :  { %1883 = vmatmul.msk.f32.gmra.mxu1 %vm158_vm0, %v83_v47  ;;  %1895 = vmatmul.msk.f32.vlgmr.msra.gmra.mxu2 %vm158_vm0, %v95_v38  ;;  %v137_v47 = vld [vmem:[%s3482_s0 + $0x398] sm:$0xff] }
  0x7b   :  { %1928 = vmatmul.msk.f32.gmra.mxu3 %vm158_vm0, %v128_v0  ;;  %v98_v0 = vld [vmem:[%s3482_s0 + $0x260] sm:$0xff] }
  0x81   :  { %1837 = vmatmul.msk.f32.gmra.mxu0 %vm158_vm0, %v37_v41 }
  0x82   :  { %1884 = vmatmul.msk.f32.gmra.mxu1 %vm158_vm0, %v84_v51  ;;  %v97_v51 = vld [vmem:[%s3482_s0 + $0x258] sm:$0xff] }
  0x83   :  { %1929 = vmatmul.msk.f32.gmra.mxu3 %vm158_vm0, %v129_v4 }
  0x86   :  { %v2369_v44 = vpop.f32.mrf.mxu0 }
  0x87   :  { %v701_v54 = vpop.f32.mrf.mxu1 }
  0x88   :  { %v702_v27 = vadd.f32 %v2508_v25, %v701_v54 }
  0x89   :  { %1838 = vmatmul.msk.f32.gmra.mxu0 %vm158_vm0, %v38_v45  ;;  %v96_v45 = vld [vmem:[%s3482_s0 + $0x250] sm:$0xff] }
  0x8a   :  { %1885 = vmatmul.msk.f32.gmra.mxu1 %vm158_vm0, %v85_v56  ;;  %v991_v30 = vmax.f32 %v702_v27, 0.0  ;;  %1896 = vmatmul.msk.f32.gmra.mxu2 %vm158_vm0, %v96_v45  ;;  %v138_v56 = vld [vmem:[%s3482_s0 + $0x3a0] sm:$0xff] }
  0x8b   :  { %1930 = vmatmul.msk.f32.gmra.mxu3 %vm158_vm0, %v130_v7  ;;  %v87_v7 = vld [vmem:[%s3482_s0 + $0x208] sm:$0xff] }
  0x8c   :  { %1984 = vmatpush.xpose.msk.msrb.mxu3 %vm1075_vm1, %v991_v30 }
  0x8e   :  { %v2383_v48 = vpop.f32.mrf.mxu0  ;;  %v2465_v11 = vpop.f32.mrf.mxu3 }
  0x8f   :  { %v2418_v59 = vpop.f32.mrf.mxu1 }
  0x91   :  { %1839 = vmatmul.msk.f32.gmra.mxu0 %vm158_vm0, %v39_v49 }
  0x92   :  { %1897 = vmatmul.msk.f32.gmra.mxu2 %vm158_vm0, %v97_v51  ;;  %1886 = vmatmul.msk.f32.gmra.mxu1 %vm158_vm0, %v86_v55 }
  0x93   :  { %1931 = vmatmul.msk.f32.gmra.mxu3 %vm158_vm0, %v131_v12  ;;  %v139_v12 = vld [vmem:[%s3482_s0 + $0x3a8] sm:$0xff] }
  0x96   :  { %v2397_v52 = vpop.f32.mrf.mxu0  ;;  %v2479_v16 = vpop.f32.mrf.mxu3 }
  0x97   :  { %v2430_v63 = vpop.f32.mrf.mxu1 }
  0x99   :  { %1840 = vmatmul.msk.f32.gmra.mxu0 %vm158_vm0, %v40_v53 }
  0x9a   :  { %1898 = vmatmul.msk.f32.gmra.mxu2 %vm158_vm0, %v98_v0  ;;  %1887 = vmatmul.msk.f32.gmra.mxu1 %vm158_vm0, %v87_v7 }
  0x9b   :  { %1932 = vmatmul.msk.f32.gmra.mxu3 %vm158_vm0, %v132_v17 }
  0x9e   :  { %v2411_v57 = vpop.f32.mrf.mxu0  ;;  %v2491_v20 = vpop.f32.mrf.mxu3 }
  0x9f   :  { %v2442_v3 = vpop.f32.mrf.mxu1 }
  0xa1   :  { %1841 = vmatmul.msk.f32.gmra.mxu0 %vm158_vm0, %v41_v58 }
  0xa3   :  { %1933 = vmatmul.msk.f32.gmra.mxu3 %vm158_vm0, %v133_v22  ;;  %v54_v22 = vld [vmem:[%s3482_s0 + $0x100] sm:$0xff] }
  0xa6   :  { %v2424_v61 = vpop.f32.mrf.mxu0  ;;  %v2510_v26 = vpop.f32.mrf.mxu3 }
  0xa7   :  { %v2457_v8 = vpop.f32.mrf.mxu1 }
  0xa9   :  { %1842 = vmatmul.msk.f32.gmra.mxu0 %vm158_vm0, %v42_v62 }
  0xab   :  { %1934 = vmatmul.msk.f32.gmra.mxu3 %vm158_vm0, %v134_v29 }
  0xae   :  { %v2436_v1 = vpop.f32.mrf.mxu0  ;;  %v2525_v33 = vpop.f32.mrf.mxu3 }
  0xaf   :  { %v2477_v15 = vpop.f32.mrf.mxu1 }
  0xb1   :  { %1843 = vmatmul.msk.f32.gmra.mxu0 %vm158_vm0, %v43_v2 }
  0xb3   :  { %1935 = vmatmul.msk.f32.gmra.mxu3 %vm158_vm0, %v135_v34  ;;  %v140_v34 = vld [vmem:[%s3482_s0 + $0x3b0] sm:$0xff] }
  0xb6   :  { %v2448_v5 = vpop.f32.mrf.mxu0  ;;  %v2542_v39 = vpop.f32.mrf.mxu3 }
  0xb7   :  { %v2494_v21 = vpop.f32.mrf.mxu1 }
  0xb9   :  { %1844 = vmatmul.msk.f32.gmra.mxu0 %vm158_vm0, %v44_v6 }
  0xbb   :  { %1936 = vmatmul.msk.f32.gmra.mxu3 %vm158_vm0, %v136_v40 }
  0xbe   :  { %v2460_v9 = vpop.f32.mrf.mxu0  ;;  %v2558_v46 = vpop.f32.mrf.mxu3 }
  0xbf   :  { %v2514_v28 = vpop.f32.mrf.mxu1  ;;  %v582_v7 = vadd.f32 %v2508_v25, %v2460_v9 }
  0xc1   :  { %1845 = vmatmul.msk.f32.gmra.mxu0 %vm158_vm0, %v45_v10 }
  0xc3   :  { %1937 = vmatmul.msk.f32.gmra.mxu3 %vm158_vm0, %v137_v47 }
  0xc6   :  { %v2472_v13 = vpop.f32.mrf.mxu0  ;;  %v2572_v53 = vpop.f32.mrf.mxu3 }
  0xc7   :  { %v2532_v35 = vpop.f32.mrf.mxu1 }
  0xc9   :  { %1846 = vmatmul.msk.f32.gmra.mxu0 %vm158_vm0, %v46_v14 }
  0xcb   :  { %1938 = vmatmul.msk.f32.gmra.mxu3 %vm158_vm0, %v138_v56  ;;  %v56_v56 = vld [vmem:[%s3482_s0 + $0x110] sm:$0xff] }
  0xce   :  { %v2486_v18 = vpop.f32.mrf.mxu0  ;;  %v2593_v2 = vpop.f32.mrf.mxu3 }
  0xcf   :  { %v2552_v43 = vpop.f32.mrf.mxu1  ;;  %v588_v51 = vadd.f32 %v2508_v25, %v2486_v18 }
  0xd1   :  { %1847 = vmatmul.msk.f32.gmra.mxu0 %vm158_vm0, %v47_v19  ;;  %v953_v0 = vmax.f32 %v588_v51, 0.0  ;;  %v59_v51 = vld [vmem:[%s3482_s0 + $0x128] sm:$0xff] }
  0xd3   :  { %1939 = vmatmul.msk.f32.gmra.mxu3 %vm158_vm0, %v139_v12 }
  0xd6   :  { %v2500_v23 = vpop.f32.mrf.mxu0  ;;  %v2619_v27 = vpop.f32.mrf.mxu3 }
  0xd7   :  { %v2575_v54 = vpop.f32.mrf.mxu1  ;;  %v591_v45 = vadd.f32 %v2508_v25, %v2500_v23 }
  0xd9   :  { %1848 = vmatmul.msk.f32.gmra.mxu0 %vm158_vm0, %v48_v24  ;;  %v99_v24 = vld [vmem:[%s3482_s0 + $0x268] sm:$0xff]  ;;  %v954_v55 = vmax.f32 %v591_v45, 0.0 }
  0xda   :  { %1899 = vmatmul.msk.f32.gmra.mxu2 %vm158_vm0, %v99_v24  ;;  %v951_v24 = vmax.f32 %v582_v7, 0.0  ;;  %v60_v7 = vld [vmem:[%s3482_s0 + $0x130] sm:$0xff] }
  0xdb   :  { %1940 = vmatmul.msk.f32.gmra.mxu3 %vm158_vm0, %v140_v34 }
  0xde   :  { %v2520_v31 = vpop.f32.mrf.mxu0 }
  0xdf   :  { %v2602_v10 = vpop.f32.mrf.mxu1 }
  0xe1   :  { %1849 = vmatmul.msk.f32.gmra.mxu0 %vm158_vm0, %v49_v32  ;;  %v88_v32 = vld [vmem:[%s3482_s0 + $0x210] sm:$0xff] }
  0xe2   :  { %1888 = vmatmul.msk.f32.gmra.mxu1 %vm158_vm0, %v88_v32  ;;  %v576_v32 = vadd.f32 %v2508_v25, %v2436_v1  ;;  %v92_v1 = vld [vmem:[%s3482_s0 + $0x230] sm:$0xff] }
  0xe6   :  { %v596_v36 = vpop.f32.mrf.mxu0 }
  0xe7   :  { %v597_v29 = vadd.f32 %v2508_v25, %v596_v36  ;;  %v2633_v36 = vpop.f32.mrf.mxu1 }
  0xe9   :  { %1850 = vmatmul.msk.f32.gmra.mxu0 %vm158_vm0, %v50_v37  ;;  %v594_v37 = vadd.f32 %v2508_v25, %v2520_v31  ;;  %v956_v38 = vmax.f32 %v597_v29, 0.0  ;;  %v2646_v31 = vpop.f32.mrf.mxu3  ;;  %v91_v29 = vld [vmem:[%s3482_s0 + $0x228] sm:$0xff] }
  0xeb   :  { %v955_v47 = vmax.f32 %v594_v37, 0.0  ;;  %v58_v37 = vld [vmem:[%s3482_s0 + $0x120] sm:$0xff] }
  0xee   :  { %v599_v41 = vpop.f32.mrf.mxu0 }
  0xef   :  { %v600_v14 = vadd.f32 %v2508_v25, %v599_v41  ;;  %v55_v41 = vld [vmem:[%s3482_s0 + $0x108] sm:$0xff] }
  0xf1   :  { %1851 = vmatmul.msk.f32.gmra.mxu0 %vm158_vm0, %v51_v42  ;;  %v957_v30 = vmax.f32 %v600_v14, 0.0  ;;  %v100_v42 = vld [vmem:[%s3482_s0 + $0x270] sm:$0xff]  ;;  %v2674_v18 = vpop.f32.mrf.mxu3  ;;  %v57_v14 = vld [vmem:[%s3482_s0 + $0x118] sm:$0xff] }
  0xf2   :  { %1900 = vmatmul.msk.f32.gmra.mxu2 %vm158_vm0, %v100_v42  ;;  %v949_v42 = vmax.f32 %v576_v32, 0.0  ;;  %v146_v32 = vld [vmem:[%s3482_s0 + $0x3e0] sm:$0xff] }
  0xf6   :  { %v602_v49 = vpop.f32.mrf.mxu0 }
  0xf7   :  { %v603_v4 = vadd.f32 %v2508_v25, %v602_v49  ;;  %v89_v49 = vld [vmem:[%s3482_s0 + $0x218] sm:$0xff] }
  0xf8   :  { %1889 = vmatmul.msk.f32.gmra.mxu1 %vm158_vm0, %v89_v49  ;;  %v570_v49 = vadd.f32 %v2508_v25, %v2411_v57  ;;  %v93_v57 = vld [vmem:[%s3482_s0 + $0x238] sm:$0xff] }
  0xf9   :  { %1852 = vmatmul.msk.f32.gmra.mxu0 %vm158_vm0, %v52_v50  ;;  %v958_v17 = vmax.f32 %v603_v4, 0.0  ;;  %v141_v50 = vld [vmem:[%s3482_s0 + $0x3b8] sm:$0xff]  ;;  %v90_v4 = vld [vmem:[%s3482_s0 + $0x220] sm:$0xff] }
  0xfa   :  { %1941 = vmatmul.msk.f32.gmra.mxu3 %vm158_vm0, %v141_v50 }
  0xfe   :  { %v605_v58 = vpop.f32.mrf.mxu0 }
  0xff   :  { %v606_v62 = vadd.f32 %v2508_v25, %v605_v58  ;;  %v2668_v58 = vpop.f32.mrf.mxu1 }
 0x100   :  { %1890 = vmatmul.msk.f32.gmra.mxu1 %vm158_vm0, %v90_v4 }
 0x101   :  { %v959_v6 = vmax.f32 %v606_v62, 0.0  ;;  %1853 = vmatmul.msk.f32.gmra.mxu0 %vm158_vm0, %v53_v60  ;;  %v101_v60 = vld [vmem:[%s3482_s0 + $0x278] sm:$0xff]  ;;  %v585_v62 = vadd.f32 %v2508_v25, %v2472_v13 }
 0x102   :  { %1901 = vmatmul.msk.f32.gmra.mxu2 %vm158_vm0, %v101_v60  ;;  %v947_v60 = vmax.f32 %v570_v49, 0.0 }
 0x103   :  { %1950 = vmatpush.xpose.msk.msrb.mxu1 %vm1075_vm1, %v959_v6  ;;  %v142_v6 = vld [vmem:[%s3482_s0 + $0x3c0] sm:$0xff]  ;;  %v952_v12 = vmax.f32 %v585_v62, 0.0  ;;  %v145_v62 = vld [vmem:[%s3482_s0 + $0x3d8] sm:$0xff] }
 0x104   :  { %1942 = vmatmul.msk.f32.gmra.mxu3 %vm158_vm0, %v142_v6 }
 0x106   :  { %v2609_v19 = vpop.f32.mrf.mxu0 }
 0x107   :  { %1951 = vmatpush.xpose.msk.msrb.mxu1 %vm1075_vm1, %v958_v17  ;;  %v2696_v17 = vpop.f32.mrf.mxu3  ;;  %v743_v9 = vpop.f32.mrf.mxu1 }
 0x108   :  { %1891 = vmatmul.msk.f32.gmra.mxu1 %vm158_vm0, %v91_v29 }
 0x109   :  { %1854 = vmatmul.msk.f32.gmra.mxu0 %vm158_vm0, %v54_v22  ;;  %v579_v22 = vadd.f32 %v2508_v25, %v2448_v5 }
 0x10b   :  { %1952 = vmatpush.xpose.msk.msrb.mxu1 %vm1075_vm1, %v957_v30  ;;  %v143_v30 = vld [vmem:[%s3482_s0 + $0x3c8] sm:$0xff]  ;;  %v950_v5 = vmax.f32 %v579_v22, 0.0  ;;  %v561_v22 = vadd.f32 %v2508_v25, %v2369_v44 }
 0x10c   :  { %1943 = vmatmul.msk.f32.gmra.mxu3 %vm158_vm0, %v143_v30 }
 0x10e   :  { %v2636_v40 = vpop.f32.mrf.mxu0 }
 0x10f   :  { %1953 = vmatpush.xpose.msk.msrb.mxu1 %vm1075_vm1, %v956_v38  ;;  %v2718_v38 = vpop.f32.mrf.mxu3  ;;  %v746_v45 = vpop.f32.mrf.mxu1 }
 0x110   :  { %1892 = vmatmul.msk.f32.gmra.mxu1 %vm158_vm0, %v92_v1  ;;  %v747_v29 = vadd.f32 %v2508_v25, %v746_v45  ;;  %v102_v45 = vld [vmem:[%s3482_s0 + $0x280] sm:$0xff] }
 0x111   :  { %1855 = vmatmul.msk.f32.gmra.mxu0 %vm158_vm0, %v55_v41  ;;  %v573_v41 = vadd.f32 %v2508_v25, %v2424_v61  ;;  %1902 = vmatmul.msk.f32.gmra.mxu2 %vm158_vm0, %v102_v45 }
 0x113   :  { %1954 = vmatpush.xpose.msk.msrb.mxu1 %vm1075_vm1, %v955_v47  ;;  %v144_v47 = vld [vmem:[%s3482_s0 + $0x3d0] sm:$0xff]  ;;  %v948_v61 = vmax.f32 %v573_v41, 0.0  ;;  %v744_v41 = vadd.f32 %v2508_v25, %v743_v9  ;;  %v147_v9 = vld [vmem:[%s3482_s0 + $0x3e8] sm:$0xff] }
 0x114   :  { %1944 = vmatmul.msk.f32.gmra.mxu3 %vm158_vm0, %v144_v47  ;;  %v741_v47 = vadd.f32 %v2508_v25, %v2668_v58  ;;  %v738_v58 = vadd.f32 %v2508_v25, %v2633_v36  ;;  %v148_v36 = vld [vmem:[%s3482_s0 + $0x3f0] sm:$0xff] }
 0x115   :  { %v1005_v49 = vmax.f32 %v744_v41, 0.0  ;;  %v723_v41 = vadd.f32 %v2508_v25, %v2514_v28  ;;  %v720_v28 = vadd.f32 %v2508_v25, %v2494_v21 }
 0x116   :  { %v2662_v23 = vpop.f32.mrf.mxu0 }
 0x117   :  { %1955 = vmatpush.xpose.msk.msrb.mxu1 %vm1075_vm1, %v954_v55  ;;  %v2740_v55 = vpop.f32.mrf.mxu3 }
 0x118   :  { %1893 = vmatmul.msk.f32.gmra.mxu1 %vm158_vm0, %v93_v57  ;;  %v103_v57 = vld [vmem:[%s3482_s0 + $0x288] sm:$0xff] }
 0x119   :  { %1856 = vmatmul.msk.f32.gmra.mxu0 %vm158_vm0, %v56_v56  ;;  %v567_v56 = vadd.f32 %v2508_v25, %v2397_v52  ;;  %v749_v52 = vpop.f32.mrf.mxu1  ;;  %1903 = vmatmul.msk.f32.gmra.mxu2 %vm158_vm0, %v103_v57  ;;  %v66_v57 = vld [vmem:[%s3482_s0 + $0x160] sm:$0xff] }
 0x11b   :  { %1956 = vmatpush.xpose.msk.msrb.mxu1 %vm1075_vm1, %v953_v0  ;;  %v564_v0 = vadd.f32 %v2508_v25, %v2383_v48  ;;  %v946_v4 = vmax.f32 %v567_v56, 0.0  ;;  %v1004_v56 = vmax.f32 %v741_v47, 0.0  ;;  %v65_v47 = vld [vmem:[%s3482_s0 + $0x158] sm:$0xff] }
 0x11c   :  { %1945 = vmatmul.msk.f32.gmra.mxu3 %vm158_vm0, %v145_v62  ;;  %v735_v62 = vadd.f32 %v2508_v25, %v2602_v10  ;;  %v732_v10 = vadd.f32 %v2508_v25, %v2575_v54  ;;  %v149_v54 = vld [vmem:[%s3482_s0 + $0x3f8] sm:$0xff] }
 0x11d   :  { %v945_v48 = vmax.f32 %v564_v0, 0.0  ;;  %v1003_v0 = vmax.f32 %v738_v58, 0.0  ;;  %v717_v58 = vadd.f32 %v2508_v25, %v2477_v15  ;;  %v714_v15 = vadd.f32 %v2508_v25, %v2457_v8 }
 0x11e   :  { %v2690_v13 = vpop.f32.mrf.mxu0 }
 0x11f   :  { %1957 = vmatpush.xpose.msk.msrb.mxu1 %vm1075_vm1, %v952_v12  ;;  %v750_v12 = vadd.f32 %v2508_v25, %v749_v52  ;;  %v63_v52 = vld [vmem:[%s3482_s0 + $0x148] sm:$0xff] }
 0x121   :  { %1857 = vmatmul.msk.f32.gmra.mxu0 %vm158_vm0, %v57_v14  ;;  %v2763_v14 = vpop.f32.mrf.mxu3  ;;  %v1007_v30 = vmax.f32 %v750_v12, 0.0 }
 0x123   :  { %1958 = vmatpush.xpose.msk.msrb.mxu1 %vm1075_vm1, %v951_v24  ;;  %v94_v24 = vld [vmem:[%s3482_s0 + $0x240] sm:$0xff] }
 0x124   :  { %1894 = vmatmul.msk.f32.gmra.mxu1 %vm158_vm0, %v94_v24  ;;  %1946 = vmatmul.msk.f32.gmra.mxu3 %vm158_vm0, %v146_v32  ;;  %v1001_v24 = vmax.f32 %v732_v10, 0.0  ;;  %v995_v10 = vmax.f32 %v714_v15, 0.0  ;;  %v2944_v15 = vpop.f32.mrf.mxu1 }
 0x126   :  { %v2712_v34 = vpop.f32.mrf.mxu0 }
 0x127   :  { %1959 = vmatpush.xpose.msk.msrb.mxu1 %vm1075_vm1, %v950_v5  ;;  %v944_v5 = vmax.f32 %v561_v22, 0.0  ;;  %v104_v22 = vld [vmem:[%s3482_s0 + $0x290] sm:$0xff] }
 0x128   :  { %1904 = vmatmul.msk.f32.gmra.mxu2 %vm158_vm0, %v104_v22  ;;  %v67_v22 = vld [vmem:[%s3482_s0 + $0x168] sm:$0xff] }
 0x129   :  { %1858 = vmatmul.msk.f32.gmra.mxu0 %vm158_vm0, %v58_v37  ;;  %v61_v37 = vld [vmem:[%s3482_s0 + $0x138] sm:$0xff]  ;;  %v2786_v1 = vpop.f32.mrf.mxu3 }
 0x12b   :  { %1960 = vmatpush.xpose.msk.msrb.mxu1 %vm1075_vm1, %v949_v42  ;;  %v1006_v42 = vmax.f32 %v747_v29, 0.0 }
 0x12c   :  { %1947 = vmatmul.msk.f32.gmra.mxu3 %vm158_vm0, %v147_v9 }
 0x12e   :  { %v2734_v50 = vpop.f32.mrf.mxu0 }
 0x12f   :  { %1961 = vmatpush.xpose.msk.msrb.mxu1 %vm1075_vm1, %v948_v61 }
 0x131   :  { %1859 = vmatmul.msk.f32.gmra.mxu0 %vm158_vm0, %v59_v51  ;;  %v62_v51 = vld [vmem:[%s3482_s0 + $0x140] sm:$0xff] }
 0x133   :  { %1962 = vmatpush.xpose.msk.msrb.mxu1 %vm1075_vm1, %v947_v60  ;;  %v2808_v60 = vpop.f32.mrf.mxu3 }
 0x134   :  { %1948 = vmatmul.msk.f32.gmra.mxu3 %vm158_vm0, %v148_v36  ;;  %v107_v36 = vld [vmem:[%s3482_s0 + $0x2a8] sm:$0xff] }
 0x136   :  { %v2756_v6 = vpop.f32.mrf.mxu0 }
 0x137   :  { %1963 = vmatpush.xpose.msk.msrb.mxu1 %vm1075_vm1, %v946_v4 }
 0x139   :  { %1860 = vmatmul.msk.f32.gmra.mxu0 %vm158_vm0, %v60_v7  ;;  %v1002_v7 = vmax.f32 %v735_v62, 0.0  ;;  %v996_v62 = vmax.f32 %v717_v58, 0.0 }
 0x13b   :  { %1964 = vmatpush.xpose.msk.msrb.mxu1 %vm1075_vm1, %v945_v48  ;;  %v2830_v12 = vpop.f32.mrf.mxu3  ;;  %v729_v48 = vadd.f32 %v2508_v25, %v2552_v43  ;;  %v726_v43 = vadd.f32 %v2508_v25, %v2532_v35  ;;  %v2863_v35 = vld [vmem:[%s3485_s3] sm:$0x1]  ;;  %s1813_s3 = sshll.u32 %s3487_s5, 4  ;;  %s1814_s3 = int_to_ptr.hbm [resolvable:$true] %s1813_s3 }
 0x13c   :  { %1949 = vmatmul.msk.f32.gmra.mxu3 %vm158_vm0, %v149_v54 }
 0x13d   :  { %v1000_v32 = vmax.f32 %v729_v48, 0.0  ;;  %v708_v48 = vadd.f32 %v2508_v25, %v2430_v63  ;;  %v68_v63 = vld [vmem:[%s3482_s0 + $0x170] sm:$0xff] }
 0x13e   :  { %v2778_v44 = vpop.f32.mrf.mxu0 }
 0x13f   :  { %1965 = vmatpush.xpose.msk.msrb.mxu1 %vm1075_vm1, %v944_v5 }
 0x141   :  { %1861 = vmatmul.msk.f32.gmra.mxu0 %vm158_vm0, %v61_v37  ;;  %v105_v37 = vld [vmem:[%s3482_s0 + $0x298] sm:$0xff] }
 0x142   :  { %1905 = vmatmul.msk.f32.gmra.mxu2 %vm158_vm0, %v105_v37  ;;  %1966 = vmatmul.msk.f32.vlgmr.msrb.gmra.mxu1 %vm1075_vm1, %v2863_v35  ;;  %v891_v37 = vadd.f32 %v2508_v25, %v2830_v12 }
 0x143   :  { %2001 = vmatpush.xpose.msk.msra.mxu1 %vm1075_vm1, %v1007_v30  ;;  %v64_v30 = vld [vmem:[%s3482_s0 + $0x150] sm:$0xff]  ;;  %v893_v5 = vpop.f32.mrf.mxu3 }
 0x144   :  { %v894_v54 = vadd.f32 %v2508_v25, %v893_v5 }
 0x146   :  { %v2800_v61 = vpop.f32.mrf.mxu0 }
 0x147   :  { %2002 = vmatpush.xpose.msk.msra.mxu1 %vm1075_vm1, %v1006_v42  ;;  %v999_v42 = vmax.f32 %v726_v43, 0.0  ;;  %v993_v43 = vmax.f32 %v708_v48, 0.0 }
 0x149   :  { %1862 = vmatmul.msk.f32.gmra.mxu0 %vm158_vm0, %v62_v51  ;;  %v106_v51 = vld [vmem:[%s3482_s0 + $0x2a0] sm:$0xff] }
 0x14a   :  { %1906 = vmatmul.msk.f32.gmra.mxu2 %vm158_vm0, %v106_v51 }
 0x14b   :  { %2003 = vmatpush.xpose.msk.msra.mxu1 %vm1075_vm1, %v1005_v49  ;;  %v998_v49 = vmax.f32 %v723_v41, 0.0  ;;  %v2875_v9 = vpop.f32.mrf.mxu3  ;;  %v1055_v41 = vmax.f32 %v894_v54, 0.0 }
 0x14e   :  { %v2822_v4 = vpop.f32.mrf.mxu0 }
 0x14f   :  { %2004 = vmatpush.xpose.msk.msra.mxu1 %vm1075_vm1, %v1004_v56  ;;  %v997_v56 = vmax.f32 %v720_v28, 0.0  ;;  %v888_v28 = vadd.f32 %v2508_v25, %v2808_v60 }
 0x151   :  { %1863 = vmatmul.msk.f32.gmra.mxu0 %vm158_vm0, %v63_v52  ;;  %v711_v52 = vadd.f32 %v2508_v25, %v2442_v3  ;;  %v108_v3 = vld [vmem:[%s3482_s0 + $0x2b0] sm:$0xff] }
 0x152   :  { %1907 = vmatmul.msk.f32.gmra.mxu2 %vm158_vm0, %v107_v36  ;;  %v110_v36 = vld [vmem:[%s3482_s0 + $0x2c0] sm:$0xff] }
 0x153   :  { %2005 = vmatpush.xpose.msk.msra.mxu1 %vm1075_vm1, %v1003_v0  ;;  %v2889_v0 = vpop.f32.mrf.mxu3 }
 0x156   :  { %v2844_v29 = vpop.f32.mrf.mxu0 }
 0x157   :  { %2006 = vmatpush.xpose.msk.msra.mxu1 %vm1075_vm1, %v1002_v7 }
 0x159   :  { %1864 = vmatmul.msk.f32.gmra.mxu0 %vm158_vm0, %v64_v30  ;;  %v705_v30 = vadd.f32 %v2508_v25, %v2418_v59  ;;  %v109_v59 = vld [vmem:[%s3482_s0 + $0x2b8] sm:$0xff] }
 0x15a   :  { %1908 = vmatmul.msk.f32.gmra.mxu2 %vm158_vm0, %v108_v3 }
 0x15b   :  { %2007 = vmatpush.xpose.msk.msra.mxu1 %vm1075_vm1, %v1001_v24  ;;  %v2905_v8 = vpop.f32.mrf.mxu3  ;;  %v994_v24 = vmax.f32 %v711_v52, 0.0  ;;  %v992_v5 = vmax.f32 %v705_v30, 0.0 }
 0x15e   :  { %v2867_v45 = vpop.f32.mrf.mxu0 }
 0x15f   :  { %2008 = vmatpush.xpose.msk.msra.mxu1 %vm1075_vm1, %v1000_v32 }
 0x161   :  { %1865 = vmatmul.msk.f32.gmra.mxu0 %vm158_vm0, %v65_v47 }
 0x162   :  { %1909 = vmatmul.msk.f32.gmra.mxu2 %vm158_vm0, %v109_v59  ;;  %v639_v59 = vadd.f32 %v2508_v25, %v2844_v29 }
 0x163   :  { %2009 = vmatpush.xpose.msk.msra.mxu1 %vm1075_vm1, %v999_v42  ;;  %v2925_v42 = vpop.f32.mrf.mxu2  ;;  %v2927_v47 = vpop.f32.mrf.mxu3 }
 0x166   :  { %v644_v21 = vpop.f32.mrf.mxu0 }
 0x167   :  { %2010 = vmatpush.xpose.msk.msra.mxu1 %vm1075_vm1, %v998_v49  ;;  %v1054_v49 = vmax.f32 %v891_v37, 0.0  ;;  %v645_v3 = vadd.f32 %v2508_v25, %v644_v21  ;;  %v642_v21 = vadd.f32 %v2508_v25, %v2867_v45  ;;  %v873_v45 = vadd.f32 %v2508_v25, %v2696_v17 }
 0x168   :  { %v870_v17 = vadd.f32 %v2508_v25, %v2674_v18  ;;  %v113_v18 = vld [vmem:[%s3482_s0 + $0x2d8] sm:$0xff] }
 0x169   :  { %1866 = vmatmul.msk.f32.gmra.mxu0 %vm158_vm0, %v66_v57  ;;  %v885_v57 = vadd.f32 %v2508_v25, %v2786_v1 }
 0x16a   :  { %1910 = vmatmul.msk.f32.gmra.mxu2 %vm158_vm0, %v110_v36 }
 0x16b   :  { %2011 = vmatpush.xpose.msk.msra.mxu1 %vm1075_vm1, %v997_v56  ;;  %v2947_v60 = vpop.f32.mrf.mxu2  ;;  %v2953_v52 = vpop.f32.mrf.mxu3  ;;  %v1052_v48 = vmax.f32 %v885_v57, 0.0 }
 0x16e   :  { %v647_v7 = vpop.f32.mrf.mxu0 }
 0x16f   :  { %2012 = vmatpush.xpose.msk.msra.mxu1 %vm1075_vm1, %v996_v62  ;;  %v1053_v62 = vmax.f32 %v888_v28, 0.0  ;;  %v971_v28 = vmax.f32 %v642_v21, 0.0  ;;  %v861_v21 = vadd.f32 %v2508_v25, %v2593_v2  ;;  %v621_v2 = vadd.f32 %v2508_v25, %v2712_v34 }
 0x171   :  { %1867 = vmatmul.msk.f32.gmra.mxu0 %vm158_vm0, %v67_v22  ;;  %v882_v22 = vadd.f32 %v2508_v25, %v2763_v14  ;;  %v111_v14 = vld [vmem:[%s3482_s0 + $0x2c8] sm:$0xff] }
 0x172   :  { %1911 = vmatmul.msk.f32.gmra.mxu2 %vm158_vm0, %v111_v14 }
 0x173   :  { %2013 = vmatpush.xpose.msk.msra.mxu1 %vm1075_vm1, %v995_v10  ;;  %v648_v10 = vadd.f32 %v2508_v25, %v647_v7  ;;  %v1051_v30 = vmax.f32 %v882_v22, 0.0  ;;  %v879_v7 = vadd.f32 %v2508_v25, %v2740_v55  ;;  %v2980_v55 = vpop.f32.mrf.mxu3  ;;  %v630_v22 = vadd.f32 %v2508_v25, %v2778_v44 }
 0x175   :  { %v973_v54 = vmax.f32 %v648_v10, 0.0  ;;  %v867_v10 = vadd.f32 %v2508_v25, %v2646_v31  ;;  %v864_v31 = vadd.f32 %v2508_v25, %v2619_v27  ;;  %v624_v27 = vadd.f32 %v2508_v25, %v2734_v50 }
 0x176   :  { %v650_v32 = vpop.f32.mrf.mxu0  ;;  %v855_v50 = vadd.f32 %v2508_v25, %v2558_v46  ;;  %v615_v46 = vadd.f32 %v2508_v25, %v2662_v23 }
 0x177   :  { %2014 = vmatpush.xpose.msk.msra.mxu1 %vm1075_vm1, %v994_v24  ;;  %v651_v58 = vadd.f32 %v2508_v25, %v650_v32  ;;  %v972_v32 = vmax.f32 %v645_v3, 0.0  ;;  %v1046_v3 = vmax.f32 %v867_v10, 0.0 }
 0x179   :  { %1868 = vmatmul.msk.f32.gmra.mxu0 %vm158_vm0, %v68_v63  ;;  %v974_v1 = vmax.f32 %v651_v58, 0.0  ;;  %v2976_v63 = vpop.f32.mrf.mxu2 }
 0x17b   :  { %2015 = vmatpush.xpose.msk.msra.mxu1 %vm1075_vm1, %v993_v43  ;;  %v2967_v43 = vpop.f32.mrf.mxu1 }
 0x17e   :  { %v653_v12 = vpop.f32.mrf.mxu0 }
 0x17f   :  { %2016 = vmatpush.xpose.msk.msra.mxu1 %vm1075_vm1, %v992_v5  ;;  %v654_v51 = vadd.f32 %v2508_v25, %v653_v12  ;;  %v1050_v5 = vmax.f32 %v879_v7, 0.0  ;;  %v112_v12 = vld [vmem:[%s3482_s0 + $0x2d0] sm:$0xff]  ;;  %v967_v7 = vmax.f32 %v630_v22, 0.0 }
 0x180   :  { %1912 = vmatmul.msk.f32.gmra.mxu2 %vm158_vm0, %v112_v12 }
 0x181   :  { %v975_v56 = vmax.f32 %v654_v51, 0.0  ;;  %v970_v51 = vmax.f32 %v639_v59, 0.0  ;;  %v3005_v57 = vpop.f32.mrf.mxu2  ;;  %v1044_v59 = vmax.f32 %v861_v21, 0.0 }
 0x182   :  { %2017 = vmatmul.msk.f32.vlgmr.msra.gmra.mxu1 %vm1075_vm1, %v2863_v35 }
 0x183   :  { %2052 = vmatpush.xpose.msk.msrb.mxu1 %vm1075_vm1, %v1055_v41  ;;  %1967 = vmatpush.xpose.msk.msrb.mxu2 %vm1075_vm1, %v975_v56  ;;  %v876_v41 = vadd.f32 %v2508_v25, %v2718_v38  ;;  %v636_v38 = vadd.f32 %v2508_v25, %v2822_v4  ;;  %v2998_v29 = vpop.f32.mrf.mxu1  ;;  %v1048_v56 = vmax.f32 %v873_v45, 0.0  ;;  %v633_v4 = vadd.f32 %v2508_v25, %v2800_v61 }
 0x185   :  { %v969_v36 = vmax.f32 %v636_v38, 0.0 }
 0x186   :  { %v2959_v24 = vpop.f32.mrf.mxu0 }
 0x187   :  { %2053 = vmatpush.xpose.msk.msrb.mxu1 %vm1075_vm1, %v1054_v49  ;;  %1968 = vmatpush.xpose.msk.msrb.mxu2 %vm1075_vm1, %v974_v1  ;;  %v1049_v49 = vmax.f32 %v876_v41, 0.0  ;;  %v1047_v1 = vmax.f32 %v870_v17, 0.0  ;;  %v852_v17 = vadd.f32 %v2508_v25, %v2542_v39  ;;  %v962_v39 = vmax.f32 %v615_v46, 0.0 }
 0x188   :  { %1913 = vmatmul.msk.f32.gmra.mxu2 %vm158_vm0, %v113_v18 }
 0x189   :  { %v791_v44 = vpop.f32.mrf.mxu2 }
 0x18b   :  { %2054 = vmatpush.xpose.msk.msrb.mxu1 %vm1075_vm1, %v1053_v62  ;;  %1969 = vmatpush.xpose.msk.msrb.mxu2 %vm1075_vm1, %v973_v54  ;;  %v3007_v62 = vpop.f32.mrf.mxu3  ;;  %v3027_v54 = vpop.f32.mrf.mxu1 }
 0x18e   :  { %v2978_v37 = vpop.f32.mrf.mxu0 }
 0x18f   :  { %2055 = vmatpush.xpose.msk.msrb.mxu1 %vm1075_vm1, %v1052_v48  ;;  %1970 = vmatpush.xpose.msk.msrb.mxu2 %vm1075_vm1, %v972_v32  ;;  %v968_v48 = vmax.f32 %v633_v4, 0.0  ;;  %v1045_v32 = vmax.f32 %v864_v31, 0.0  ;;  %v609_v31 = vadd.f32 %v2508_v25, %v2609_v19 }
 0x191   :  { %v794_v12 = vpop.f32.mrf.mxu2 }
 0x193   :  { %2056 = vmatpush.xpose.msk.msrb.mxu1 %vm1075_vm1, %v1051_v30  ;;  %1971 = vmatpush.xpose.msk.msrb.mxu2 %vm1075_vm1, %v971_v28  ;;  %v627_v30 = vadd.f32 %v2508_v25, %v2756_v6  ;;  %v3032_v14 = vpop.f32.mrf.mxu3  ;;  %v858_v6 = vadd.f32 %v2508_v25, %v2572_v53  ;;  %v965_v28 = vmax.f32 %v624_v27, 0.0  ;;  %v3048_v45 = vpop.f32.mrf.mxu1  ;;  %v618_v53 = vadd.f32 %v2508_v25, %v2690_v13 }
 0x194   :  { %v849_v13 = vadd.f32 %v2508_v25, %v2525_v33  ;;  %v792_v27 = vadd.f32 %v2508_v25, %v791_v44  ;;  %v786_v44 = vadd.f32 %v2508_v25, %v2976_v63 }
 0x195   :  { %v966_v41 = vmax.f32 %v627_v30, 0.0  ;;  %v963_v4 = vmax.f32 %v618_v53, 0.0 }
 0x196   :  { %v3000_v58 = vpop.f32.mrf.mxu0  ;;  %v1019_v53 = vmax.f32 %v786_v44, 0.0 }
 0x197   :  { %2057 = vmatpush.xpose.msk.msrb.mxu1 %vm1075_vm1, %v1050_v5  ;;  %1972 = vmatpush.xpose.msk.msrb.mxu2 %vm1075_vm1, %v970_v51  ;;  %v964_v51 = vmax.f32 %v621_v2, 0.0 }
 0x199   :  { %v797_v18 = vpop.f32.mrf.mxu2 }
 0x19a   :  { %v798_v33 = vadd.f32 %v2508_v25, %v797_v18 }
 0x19b   :  { %2058 = vmatpush.xpose.msk.msrb.mxu1 %vm1075_vm1, %v1049_v49  ;;  %1973 = vmatpush.xpose.msk.msrb.mxu2 %vm1075_vm1, %v969_v36  ;;  %v1043_v49 = vmax.f32 %v858_v6, 0.0  ;;  %v3053_v38 = vpop.f32.mrf.mxu3  ;;  %v1041_v36 = vmax.f32 %v852_v17, 0.0  ;;  %v767_v10 = vpop.f32.mrf.mxu1  ;;  %v789_v6 = vadd.f32 %v2508_v25, %v3005_v57  ;;  %v783_v57 = vadd.f32 %v2508_v25, %v2947_v60 }
 0x19c   :  { %v1023_v30 = vmax.f32 %v798_v33, 0.0 }
 0x19d   :  { %v1018_v46 = vmax.f32 %v783_v57, 0.0 }
 0x19e   :  { %v3022_v61 = vpop.f32.mrf.mxu0 }
 0x19f   :  { %2059 = vmatpush.xpose.msk.msrb.mxu1 %vm1075_vm1, %v1048_v56  ;;  %1974 = vmatpush.xpose.msk.msrb.mxu2 %vm1075_vm1, %v968_v48  ;;  %v1042_v56 = vmax.f32 %v855_v50, 0.0  ;;  %v1040_v48 = vmax.f32 %v849_v13, 0.0  ;;  %v1020_v50 = vmax.f32 %v789_v6, 0.0 }
 0x1a3   :  { %2060 = vmatpush.xpose.msk.msrb.mxu1 %vm1075_vm1, %v1047_v1  ;;  %1975 = vmatpush.xpose.msk.msrb.mxu2 %vm1075_vm1, %v967_v7  ;;  %v612_v1 = vadd.f32 %v2508_v25, %v2636_v40  ;;  %v3074_v23 = vpop.f32.mrf.mxu3  ;;  %v795_v40 = vadd.f32 %v2508_v25, %v794_v12  ;;  %v960_v7 = vmax.f32 %v609_v31, 0.0  ;;  %v770_v21 = vpop.f32.mrf.mxu1 }
 0x1a4   :  { %v3104_v12 = vpop.f32.mrf.mxu2  ;;  %v771_v18 = vadd.f32 %v2508_v25, %v770_v21 }
 0x1a5   :  { %v1022_v19 = vmax.f32 %v795_v40, 0.0 }
 0x1a6   :  { %v3040_v5 = vpop.f32.mrf.mxu0  ;;  %v1014_v40 = vmax.f32 %v771_v18, 0.0 }
 0x1a7   :  { %2061 = vmatpush.xpose.msk.msrb.mxu1 %vm1075_vm1, %v1046_v3  ;;  %1976 = vmatpush.xpose.msk.msrb.mxu2 %vm1075_vm1, %v966_v41  ;;  %v961_v3 = vmax.f32 %v612_v1, 0.0 }
 0x1ab   :  { %2062 = vmatpush.xpose.msk.msrb.mxu1 %vm1075_vm1, %v1045_v32  ;;  %1977 = vmatpush.xpose.msk.msrb.mxu2 %vm1075_vm1, %v965_v28  ;;  %v3090_v41 = vpop.f32.mrf.mxu3  ;;  %v773_v28 = vpop.f32.mrf.mxu1 }
 0x1ac   :  { %v3116_v13 = vpop.f32.mrf.mxu2  ;;  %v774_v60 = vadd.f32 %v2508_v25, %v773_v28 }
 0x1ae   :  { %v3058_v34 = vpop.f32.mrf.mxu0 }
 0x1af   :  { %2063 = vmatpush.xpose.msk.msrb.mxu1 %vm1075_vm1, %v1044_v59  ;;  %1978 = vmatpush.xpose.msk.msrb.mxu2 %vm1075_vm1, %v964_v51  ;;  %v1021_v59 = vmax.f32 %v792_v27, 0.0 }
 0x1b3   :  { %2064 = vmatpush.xpose.msk.msrb.mxu1 %vm1075_vm1, %v1043_v49  ;;  %1979 = vmatpush.xpose.msk.msrb.mxu2 %vm1075_vm1, %v963_v4  ;;  %v3102_v49 = vpop.f32.mrf.mxu3  ;;  %v776_v17 = vpop.f32.mrf.mxu1 }
 0x1b4   :  { %v777_v63 = vadd.f32 %v2508_v25, %v776_v17  ;;  %v3122_v31 = vpop.f32.mrf.mxu2  ;;  %v753_v17 = vadd.f32 %v2508_v25, %v2944_v15 }
 0x1b6   :  { %v3072_v22 = vpop.f32.mrf.mxu0 }
 0x1b7   :  { %2065 = vmatpush.xpose.msk.msrb.mxu1 %vm1075_vm1, %v1042_v56  ;;  %1980 = vmatpush.xpose.msk.msrb.mxu2 %vm1075_vm1, %v962_v39  ;;  %v780_v56 = vadd.f32 %v2508_v25, %v2925_v42  ;;  %v1016_v39 = vmax.f32 %v777_v63, 0.0 }
 0x1bb   :  { %2066 = vmatpush.xpose.msk.msrb.mxu1 %vm1075_vm1, %v1041_v36  ;;  %1981 = vmatpush.xpose.msk.msrb.mxu2 %vm1075_vm1, %v961_v3  ;;  %v932_v4 = vpop.f32.mrf.mxu3  ;;  %v1017_v36 = vmax.f32 %v780_v56, 0.0  ;;  %v768_v3 = vadd.f32 %v2508_v25, %v767_v10  ;;  %v759_v10 = vadd.f32 %v2508_v25, %v2998_v29 }
 0x1bd   :  { %v1010_v44 = vmax.f32 %v759_v10, 0.0 }
 0x1be   :  { %v3085_v32 = vpop.f32.mrf.mxu0 }
 0x1bf   :  { %2067 = vmatpush.xpose.msk.msrb.mxu1 %vm1075_vm1, %v1040_v48  ;;  %1982 = vmatpush.xpose.msk.msrb.mxu2 %vm1075_vm1, %v960_v7  ;;  %v1015_v48 = vmax.f32 %v774_v60, 0.0  ;;  %v1013_v7 = vmax.f32 %v768_v3, 0.0 }
 0x1c2   :  { %2068 = vmatmul.msk.f32.vlgmr.msrb.gmra.mxu1 %vm1075_vm1, %v2863_v35  ;;  %1983 = vmatmul.msk.f32.vlgmr.msrb.gmra.mxu2 %vm1075_vm1, %v2863_v35 }
 0x1c3   :  { %2018 = vmatpush.xpose.msk.msra.mxu2 %vm1075_vm1, %v1023_v30  ;;  %v935_v33 = vpop.f32.mrf.mxu3  ;;  %v765_v30 = vadd.f32 %v2508_v25, %v3048_v45 }
 0x1c5   :  { %v1012_v21 = vmax.f32 %v765_v30, 0.0  ;;  %v3130_v6 = vpop.f32.mrf.mxu2 }
 0x1c6   :  { %v3097_v2 = vpop.f32.mrf.mxu0 }
 0x1c7   :  { %2019 = vmatpush.xpose.msk.msra.mxu2 %vm1075_vm1, %v1022_v19 }
 0x1cb   :  { %2020 = vmatpush.xpose.msk.msra.mxu2 %vm1075_vm1, %v1021_v59  ;;  %v938_v19 = vpop.f32.mrf.mxu3  ;;  %v762_v59 = vadd.f32 %v2508_v25, %v3027_v54 }
 0x1cd   :  { %v1011_v28 = vmax.f32 %v762_v59, 0.0  ;;  %v930_v59 = vadd.f32 %v2508_v25, %v3102_v49  ;;  %v3180_v49 = vld [vmem:[%s3484_s2] ss:$0 sm:$0xff] }
 0x1ce   :  { %v3109_v51 = vpop.f32.mrf.mxu0 }
 0x1cf   :  { %2021 = vmatpush.xpose.msk.msra.mxu2 %vm1075_vm1, %v1020_v50  ;;  %v756_v50 = vadd.f32 %v2508_v25, %v2967_v43 }
 0x1d1   :  { %v1009_v56 = vmax.f32 %v756_v50, 0.0  ;;  %v681_v50 = vadd.f32 %v3180_v49, %v3097_v2  ;;  %v921_v2 = vadd.f32 %v3180_v49, %v3053_v38  ;;  %v915_v38 = vadd.f32 %v3180_v49, %v3007_v62 }
 0x1d2   :  { %v666_v62 = vadd.f32 %v3180_v49, %v3022_v61 }
 0x1d3   :  { %2022 = vmatpush.xpose.msk.msra.mxu2 %vm1075_vm1, %v1019_v53  ;;  %v941_v57 = vpop.f32.mrf.mxu3  ;;  %v3140_v53 = vpop.f32.mrf.mxu2 }
 0x1d4   :  { %v942_v54 = vadd.f32 %v2508_v25, %v941_v57 }
 0x1d6   :  { %v686_v1 = vpop.f32.mrf.mxu0  ;;  %v1071_v60 = vmax.f32 %v942_v54, 0.0 }
 0x1d7   :  { %2023 = vmatpush.xpose.msk.msra.mxu2 %vm1075_vm1, %v1018_v46 }
 0x1db   :  { %2024 = vmatpush.xpose.msk.msra.mxu2 %vm1075_vm1, %v1017_v36  ;;  %v939_v36 = vadd.f32 %v2508_v25, %v938_v19 }
 0x1dd   :  { %v1070_v3 = vmax.f32 %v939_v36, 0.0 }
 0x1de   :  { %v689_v42 = vpop.f32.mrf.mxu0 }
 0x1df   :  { %2025 = vmatpush.xpose.msk.msra.mxu2 %vm1075_vm1, %v1016_v39  ;;  %v1008_v39 = vmax.f32 %v753_v17, 0.0  ;;  %v690_v30 = vadd.f32 %v2508_v25, %v689_v42 }
 0x1e3   :  { %2026 = vmatpush.xpose.msk.msra.mxu2 %vm1075_vm1, %v1015_v48  ;;  %v936_v48 = vadd.f32 %v2508_v25, %v935_v33  ;;  %v687_v33 = vadd.f32 %v2508_v25, %v686_v1  ;;  %v927_v1 = vadd.f32 %v2508_v25, %v3090_v41  ;;  %v984_v41 = vmax.f32 %v681_v50, 0.0 }
 0x1e5   :  { %v1069_v19 = vmax.f32 %v936_v48, 0.0  ;;  %v1066_v57 = vmax.f32 %v927_v1, 0.0  ;;  %v979_v48 = vmax.f32 %v666_v62, 0.0 }
 0x1e6   :  { %v692_v27 = vpop.f32.mrf.mxu0 }
 0x1e7   :  { %2027 = vmatpush.xpose.msk.msra.mxu2 %vm1075_vm1, %v1014_v40  ;;  %v693_v18 = vadd.f32 %v2508_v25, %v692_v27  ;;  %v3155_v40 = vpop.f32.mrf.mxu2  ;;  %v987_v27 = vmax.f32 %v690_v30, 0.0  ;;  %v660_v30 = vadd.f32 %v3180_v49, %v2978_v37  ;;  %v900_v37 = vadd.f32 %v3180_v49, %v2889_v0 }
 0x1eb   :  { %2028 = vmatpush.xpose.msk.msra.mxu2 %vm1075_vm1, %v1013_v7  ;;  %v988_v7 = vmax.f32 %v693_v18, 0.0  ;;  %v909_v18 = vadd.f32 %v3180_v49, %v2953_v52 }
 0x1ed   :  { %v1060_v61 = vmax.f32 %v909_v18, 0.0 }
 0x1ee   :  { %v695_v45 = vpop.f32.mrf.mxu0 }
 0x1ef   :  { %2029 = vmatpush.xpose.msk.msra.mxu2 %vm1075_vm1, %v1012_v21  ;;  %v696_v63 = vadd.f32 %v2508_v25, %v695_v45  ;;  %v933_v21 = vadd.f32 %v2508_v25, %v932_v4  ;;  %v3169_v42 = vpop.f32.mrf.mxu2  ;;  %v684_v4 = vadd.f32 %v2508_v25, %v3109_v51  ;;  %v1067_v45 = vmax.f32 %v930_v59, 0.0 }
 0x1f0   :  { %v924_v51 = vadd.f32 %v3180_v49, %v3074_v23  ;;  %v675_v23 = vadd.f32 %v3180_v49, %v3072_v22  ;;  %v843_v59 = vadd.f32 %v3180_v49, %v2491_v20 }
 0x1f1   :  { %v989_v15 = vmax.f32 %v696_v63, 0.0  ;;  %v1068_v10 = vmax.f32 %v933_v21, 0.0  ;;  %v657_v21 = vadd.f32 %v3180_v49, %v2959_v24 }
 0x1f2   :  { %v1065_v17 = vmax.f32 %v924_v51, 0.0  ;;  %v982_v63 = vmax.f32 %v675_v23, 0.0  ;;  %v1038_v0 = vmax.f32 %v843_v59, 0.0 }
 0x1f3   :  { %2030 = vmatpush.xpose.msk.msra.mxu2 %vm1075_vm1, %v1011_v28  ;;  %v986_v28 = vmax.f32 %v687_v33, 0.0 }
 0x1f6   :  { %v698_v29 = vpop.f32.mrf.mxu0 }
 0x1f7   :  { %2031 = vmatpush.xpose.msk.msra.mxu2 %vm1075_vm1, %v1010_v44  ;;  %v699_v46 = vadd.f32 %v2508_v25, %v698_v29  ;;  %v985_v44 = vmax.f32 %v684_v4, 0.0  ;;  %v678_v25 = vadd.f32 %v3180_v49, %v3085_v32  ;;  %v3191_v54 = vpop.f32.mrf.mxu2  ;;  %v918_v32 = vadd.f32 %v3180_v49, %v3032_v14 }
 0x1f8   :  { %v1064_v29 = vmax.f32 %v921_v2, 0.0  ;;  %v669_v14 = vadd.f32 %v3180_v49, %v3040_v5  ;;  %v663_v5 = vadd.f32 %v3180_v49, %v3000_v58  ;;  %v1057_v4 = vmax.f32 %v900_v37, 0.0 }
 0x1f9   :  { %v990_v43 = vmax.f32 %v699_v46, 0.0  ;;  %v672_v46 = vadd.f32 %v3180_v49, %v3058_v34  ;;  %v912_v34 = vadd.f32 %v3180_v49, %v2980_v55 }
 0x1fa   :  { %v978_v52 = vmax.f32 %v663_v5, 0.0 }
 0x1fb   :  { %2032 = vmatpush.xpose.msk.msra.mxu2 %vm1075_vm1, %v1009_v56  ;;  %1985 = vmatpush.xpose.msk.msrb.mxu3 %vm1075_vm1, %v990_v43  ;;  %v983_v56 = vmax.f32 %v678_v25, 0.0  ;;  %v1063_v43 = vmax.f32 %v918_v32, 0.0  ;;  %v981_v36 = vmax.f32 %v672_v46, 0.0 }
 0x1ff   :  { %2033 = vmatpush.xpose.msk.msra.mxu2 %vm1075_vm1, %v1008_v39  ;;  %1986 = vmatpush.xpose.msk.msrb.mxu3 %vm1075_vm1, %v989_v15  ;;  %v3208_v22 = vpop.f32.mrf.mxu2  ;;  %v980_v39 = vmax.f32 %v669_v14, 0.0  ;;  %v1061_v15 = vmax.f32 %v912_v34, 0.0  ;;  %v1480_v14 = vpop.f32.mrf.mxu1 }
 0x202   :  { %2034 = vmatmul.msk.f32.vlgmr.msra.gmra.mxu2 %vm1075_vm1, %v2863_v35 }
 0x203   :  { %2069 = vmatpush.xpose.msk.msrb.mxu2 %vm1075_vm1, %v1071_v60  ;;  %1987 = vmatpush.xpose.msk.msrb.mxu3 %vm1075_vm1, %v988_v7  ;;  %v1062_v60 = vmax.f32 %v915_v38, 0.0  ;;  %v903_v7 = vadd.f32 %v3180_v49, %v2905_v8  ;;  %v976_v8 = vmax.f32 %v657_v21, 0.0 }
 0x205   :  { %v1058_v33 = vmax.f32 %v903_v7, 0.0 }
 0x207   :  { %2070 = vmatpush.xpose.msk.msrb.mxu2 %vm1075_vm1, %v1070_v3  ;;  %1988 = vmatpush.xpose.msk.msrb.mxu3 %vm1075_vm1, %v987_v27  ;;  %v827_v55 = vpop.f32.mrf.mxu2  ;;  %v906_v3 = vadd.f32 %v3180_v49, %v2927_v47  ;;  %v846_v47 = vadd.f32 %v3180_v49, %v2510_v26  ;;  %v840_v26 = vadd.f32 %v3180_v49, %v2479_v16  ;;  %v1540_v62 = vpop.f32.mrf.mxu1 }
 0x208   :  { %v828_v51 = vadd.f32 %v3180_v49, %v827_v55 }
 0x209   :  { %v1059_v58 = vmax.f32 %v906_v3, 0.0  ;;  %v1039_v24 = vmax.f32 %v846_v47, 0.0 }
 0x20a   :  { %v1033_v25 = vmax.f32 %v828_v51, 0.0 }
 0x20b   :  { %2071 = vmatpush.xpose.msk.msrb.mxu2 %vm1075_vm1, %v1069_v19  ;;  %1989 = vmatpush.xpose.msk.msrb.mxu3 %vm1075_vm1, %v986_v28  ;;  %v977_v19 = vmax.f32 %v660_v30, 0.0 }
 0x20f   :  { %2072 = vmatpush.xpose.msk.msrb.mxu2 %vm1075_vm1, %v1068_v10  ;;  %1990 = vmatpush.xpose.msk.msrb.mxu3 %vm1075_vm1, %v985_v44  ;;  %v830_v27 = vpop.f32.mrf.mxu2  ;;  %v897_v10 = vadd.f32 %v3180_v49, %v2875_v9  ;;  %v837_v9 = vadd.f32 %v3180_v49, %v2465_v11  ;;  %v825_v11 = vadd.f32 %v3180_v49, %v3208_v22 }
 0x210   :  { %v831_v44 = vadd.f32 %v3180_v49, %v830_v27 }
 0x211   :  { %v1056_v28 = vmax.f32 %v897_v10, 0.0  ;;  %v1036_v16 = vmax.f32 %v837_v9, 0.0  ;;  %v1032_v2 = vmax.f32 %v825_v11, 0.0 }
 0x213   :  { %2073 = vmatpush.xpose.msk.msrb.mxu2 %vm1075_vm1, %v1067_v45  ;;  %1991 = vmatpush.xpose.msk.msrb.mxu3 %vm1075_vm1, %v984_v41  ;;  %v1037_v45 = vmax.f32 %v840_v26, 0.0  ;;  %v822_v41 = vadd.f32 %v3180_v49, %v3191_v54  ;;  %v810_v54 = vadd.f32 %v3180_v49, %v3130_v6 }
 0x215   :  { %v1031_v23 = vmax.f32 %v822_v41, 0.0  ;;  %v1027_v38 = vmax.f32 %v810_v54, 0.0 }
 0x217   :  { %2074 = vmatpush.xpose.msk.msrb.mxu2 %vm1075_vm1, %v1066_v57  ;;  %1992 = vmatpush.xpose.msk.msrb.mxu3 %vm1075_vm1, %v983_v56  ;;  %v833_v20 = vpop.f32.mrf.mxu2  ;;  %v1034_v57 = vmax.f32 %v831_v44, 0.0  ;;  %v816_v56 = vadd.f32 %v3180_v49, %v3155_v40  ;;  %v804_v40 = vadd.f32 %v3180_v49, %v3116_v13  ;;  %v1074_v13 = vstv %s3486_s4  ;;  %s2167_s4 = smov [#allocation3]  }
 0x218   :  { %v834_v1 = vadd.f32 %v3180_v49, %v833_v20  ;;  %s1811_s27 = sshll.u32 %s2167_s4, 4  ;;  %s1812_s27 = int_to_ptr.vmem [resolvable:$true] %s1811_s27 }
 0x219   :  { %v1029_v46 = vmax.f32 %v816_v56, 0.0  ;;  %v1025_v22 = vmax.f32 %v804_v40, 0.0 }
 0x21a   :  { %v1035_v50 = vmax.f32 %v834_v1, 0.0 }
 0x21b   :  { %2075 = vmatpush.xpose.msk.msrb.mxu2 %vm1075_vm1, %v1065_v17  ;;  %1993 = vmatpush.xpose.msk.msrb.mxu3 %vm1075_vm1, %v982_v63  ;;  %v819_v17 = vadd.f32 %v3180_v49, %v3169_v42  ;;  %v807_v42 = vadd.f32 %v3180_v49, %v3122_v31 }
 0x21d   :  { %v1030_v32 = vmax.f32 %v819_v17, 0.0 }
 0x21f   :  { %2076 = vmatpush.xpose.msk.msrb.mxu2 %vm1075_vm1, %v1064_v29  ;;  %1994 = vmatpush.xpose.msk.msrb.mxu3 %vm1075_vm1, %v981_v36  ;;  %v813_v29 = vadd.f32 %v3180_v49, %v3140_v53  ;;  %v801_v53 = vadd.f32 %v3180_v49, %v3104_v12  ;;  %v1481_v12 = vadd.f32 %v1480_v14, %v1074_v13 }
 0x220   :  { %v1541_v49 = vadd.f32 %v1540_v62, %v1074_v13 }
 0x221   :  { %v1028_v63 = vmax.f32 %v813_v29, 0.0  ;;  %v1024_v6 = vmax.f32 %v801_v53, 0.0 }
 0x223   :  { %2077 = vmatpush.xpose.msk.msrb.mxu2 %vm1075_vm1, %v1063_v43  ;;  %1995 = vmatpush.xpose.msk.msrb.mxu3 %vm1075_vm1, %v980_v39  ;;  %v1026_v43 = vmax.f32 %v807_v42, 0.0  ;;  %v2086_v39 = vmul.f32 -1.442695, %v1481_v12 }
 0x227   :  { %2078 = vmatpush.xpose.msk.msrb.mxu2 %vm1075_vm1, %v1062_v60  ;;  %1996 = vmatpush.xpose.msk.msrb.mxu3 %vm1075_vm1, %v979_v48 }
 0x22b   :  { %2079 = vmatpush.xpose.msk.msrb.mxu2 %vm1075_vm1, %v1061_v15  ;;  %1997 = vmatpush.xpose.msk.msrb.mxu3 %vm1075_vm1, %v978_v52  ;;  %v2089_v15 = vmul.f32 -1.442695, %v1541_v49 }
 0x22f   :  { %2080 = vmatpush.xpose.msk.msrb.mxu2 %vm1075_vm1, %v1060_v61  ;;  %1998 = vmatpush.xpose.msk.msrb.mxu3 %vm1075_vm1, %v977_v19 }
 0x233   :  { %2081 = vmatpush.xpose.msk.msrb.mxu2 %vm1075_vm1, %v1059_v58  ;;  %1999 = vmatpush.xpose.msk.msrb.mxu3 %vm1075_vm1, %v976_v8 }
 0x236   :  { %2000 = vmatmul.msk.f32.vlgmr.msrb.gmra.mxu3 %vm1075_vm1, %v2863_v35 }
 0x237   :  { %2082 = vmatpush.xpose.msk.msrb.mxu2 %vm1075_vm1, %v1058_v33  ;;  %2035 = vmatpush.xpose.msk.msra.mxu3 %vm1075_vm1, %v1039_v24 }
 0x23b   :  { %2083 = vmatpush.xpose.msk.msrb.mxu2 %vm1075_vm1, %v1057_v4  ;;  %2036 = vmatpush.xpose.msk.msra.mxu3 %vm1075_vm1, %v1038_v0 }
 0x23f   :  { %2084 = vmatpush.xpose.msk.msrb.mxu2 %vm1075_vm1, %v1056_v28  ;;  %2037 = vmatpush.xpose.msk.msra.mxu3 %vm1075_vm1, %v1037_v45  ;;  %v1600_v5 = vpop.f32.mrf.mxu1 }
 0x240   :  { %v1601_v3 = vadd.f32 %v1600_v5, %v1074_v13 }
 0x242   :  { %2085 = vmatmul.msk.f32.vlgmr.msrb.gmra.mxu2 %vm1075_vm1, %v2863_v35  ;;  %v2092_v58 = vmul.f32 -1.442695, %v1601_v3 }
 0x243   :  { %2038 = vmatpush.xpose.msk.msra.mxu3 %vm1075_vm1, %v1036_v16 }
 0x245   :  { %v1500_v31 = vpop.f32.mrf.mxu2 }
 0x246   :  { %v1501_v36 = vadd.f32 %v1500_v31, %v1074_v13 }
 0x247   :  { %2039 = vmatpush.xpose.msk.msra.mxu3 %vm1075_vm1, %v1035_v50 }
 0x248   :  { %v2087_v60 = vmul.f32 -1.442695, %v1501_v36 }
 0x24a   :  { %2108 = vpow2.f32 %v2087_v60 }
 0x24b   :  { %2040 = vmatpush.xpose.msk.msra.mxu3 %vm1075_vm1, %v1034_v57  ;;  %2110 = vpow2.f32 %v2086_v39 }
 0x24c   :  { %2112 = vpow2.f32 %v2089_v15 }
 0x24f   :  { %2041 = vmatpush.xpose.msk.msra.mxu3 %vm1075_vm1, %v1033_v25 }
 0x250   :  { %v2109_v55 = vpop.eup %2108 }
 0x251   :  { %v3300_v30 = vadd.f32 1.0, %v2109_v55  ;;  %v2111_v21 = vpop.eup %2110 }
 0x252   :  { %v2113_v47 = vpop.eup %2112  ;;  %v3303_v33 = vadd.f32 1.0, %v2111_v21 }
 0x253   :  { %2042 = vmatpush.xpose.msk.msra.mxu3 %vm1075_vm1, %v1032_v2  ;;  %2114 = vrcp.f32 %v3300_v30  ;;  %v3305_v27 = vadd.f32 1.0, %v2113_v47  ;;  %vm1675_vm3 = vweird.f32 %v3300_v30  ;;  %v1681_v42 = vand.u32 2147483648, %v3300_v30 }
 0x254   :  { %vm1660_vm2 = vweird.f32 %v3303_v33  ;;  %v1666_v53 = vand.u32 2147483648, %v3303_v33 }
 0x255   :  { %vm1705_vm6 = vweird.f32 %v3305_v27  ;;  %v1711_v31 = vand.u32 2147483648, %v3305_v27  ;;  %v1682_v12 = vor.u32 1.1754944e-38, %v1681_v42 }
 0x257   :  { %2043 = vmatpush.xpose.msk.msra.mxu3 %vm1075_vm1, %v1031_v23  ;;  %v1712_v3 = vor.u32 1.1754944e-38, %v1711_v31 }
 0x259   :  { %v3307_v8 = vpop.eup %2114 }
 0x25a   :  { %v1671_v45 = vmul.f32 %v3307_v8, %v3300_v30  ;;  %vm1676_vm4 = vweird.f32 %v3307_v8 }
 0x25b   :  { %2044 = vmatpush.xpose.msk.msra.mxu3 %vm1075_vm1, %v1030_v32  ;;  %vm3361_vm8 = vmor %vm1675_vm3, %vm1676_vm4 }
 0x25c   :  { %v1672_v44 = vsub.f32 1.0, %v1671_v45 }
 0x25e   :  { %v1673_v17 = vmul.f32 %v3307_v8, %v1672_v44 }
 0x25f   :  { %2045 = vmatpush.xpose.msk.msra.mxu3 %vm1075_vm1, %v1029_v46 }
 0x260   :  { %v1674_v40 = vadd.f32 %v3307_v8, %v1673_v17 }
 0x262   :  { %v1678_v55 = vsel %vm3361_vm8, %v3307_v8, %v1674_v40 }
 0x263   :  { %2046 = vmatpush.xpose.msk.msra.mxu3 %vm1075_vm1, %v1028_v63 }
 0x267   :  { %2047 = vmatpush.xpose.msk.msra.mxu3 %vm1075_vm1, %v1027_v38 }
 0x26b   :  { %2048 = vmatpush.xpose.msk.msra.mxu3 %vm1075_vm1, %v1026_v43 }
 0x26f   :  { %2049 = vmatpush.xpose.msk.msra.mxu3 %vm1075_vm1, %v1025_v22 }
 0x273   :  { %2050 = vmatpush.xpose.msk.msra.mxu3 %vm1075_vm1, %v1024_v6 }
 0x276   :  { %2051 = vmatmul.msk.f32.vlgmr.msra.gmra.mxu3 %vm1075_vm1, %v2863_v35 }
 0x285   :  { %v1560_v34 = vpop.f32.mrf.mxu2 }
 0x286   :  { %v1561_v52 = vadd.f32 %v1560_v34, %v1074_v13 }
 0x288   :  { %v2090_v37 = vmul.f32 -1.442695, %v1561_v52 }
 0x2b9   :  { %v1520_v18 = vpop.f32.mrf.mxu3 }
 0x2ba   :  { %v1521_v35 = vadd.f32 %v1520_v18, %v1074_v13  ;;  %v1664_v18 = vand.u32 2147483647, %v3303_v33 }
 0x2bc   :  { %v2088_v7 = vmul.f32 -1.442695, %v1521_v35  ;;  %vm3406_vm15 = vcmp.eq.f32.partialorder %v1664_v18, 8.507059e+37 }
 0x2be   :  { %2116 = vpow2.f32 %v2088_v7 }
 0x2bf   :  { %2118 = vpow2.f32 %v2092_v58  ;;  %v1709_v58 = vand.u32 2147483647, %v3305_v27 }
 0x2c4   :  { %v2117_v59 = vpop.eup %2116 }
 0x2c5   :  { %v1620_v48 = vpop.f32.mrf.mxu2  ;;  %v2119_v24 = vpop.eup %2118  ;;  %v3311_v26 = vadd.f32 1.0, %v2117_v59 }
 0x2c6   :  { %v1621_v61 = vadd.f32 %v1620_v48, %v1074_v13  ;;  %v3313_v0 = vadd.f32 1.0, %v2119_v24  ;;  %v1667_v48 = vor.u32 1.1754944e-38, %v1666_v53 }
 0x2c7   :  { %vm1690_vm12 = vweird.f32 %v3311_v26  ;;  %v1696_v47 = vand.u32 2147483648, %v3311_v26 }
 0x2c8   :  { %v2093_v19 = vmul.f32 -1.442695, %v1621_v61  ;;  %vm1750_vm0 = vweird.f32 %v3313_v0  ;;  %v1756_v59 = vand.u32 2147483648, %v3313_v0 }
 0x2ca   :  { %2120 = vpow2.f32 %v2093_v19 }
 0x2cb   :  { %2122 = vpow2.f32 %v2090_v37 }
 0x2cc   :  { %2124 = vrcp.f32 %v3303_v33 }
 0x2cd   :  { %2126 = vrcp.f32 %v3305_v27 }
 0x2ce   :  { %2128 = vrcp.f32 %v3311_v26 }
 0x2cf   :  { %2130 = vrcp.f32 %v3313_v0 }
 0x2d0   :  { %v2121_v10 = vpop.eup %2120 }
 0x2d1   :  { %v2123_v4 = vpop.eup %2122  ;;  %v3317_v20 = vadd.f32 1.0, %v2121_v10 }
 0x2d2   :  { %v3315_v28 = vpop.eup %2124  ;;  %v3323_v1 = vadd.f32 1.0, %v2123_v4 }
 0x2d3   :  { %v3319_v9 = vpop.eup %2126  ;;  %v1656_v16 = vmul.f32 %v3315_v28, %v3303_v33  ;;  %2132 = vrcp.f32 %v3317_v20  ;;  %vm1661_vm5 = vweird.f32 %v3315_v28  ;;  %v1771_v24 = vand.u32 2147483648, %v3317_v20 }
 0x2d4   :  { %v1701_v50 = vmul.f32 %v3319_v9, %v3305_v27  ;;  %2134 = vrcp.f32 %v3323_v1  ;;  %v3333_v25 = vpop.eup %2128  ;;  %vm1706_vm7 = vweird.f32 %v3319_v9  ;;  %vm3372_vm9 = vmor %vm1660_vm2, %vm1661_vm5  ;;  %vm1720_vm14 = vweird.f32 %v3323_v1 }
 0x2d5   :  { %v1657_v57 = vsub.f32 1.0, %v1656_v16  ;;  %v3335_v2 = vpop.eup %2130  ;;  %v1686_v46 = vmul.f32 %v3333_v25, %v3311_v26  ;;  %vm3377_vm10 = vmor %vm1705_vm6, %vm1706_vm7  ;;  %vm1691_vm13 = vweird.f32 %v3333_v25  ;;  %vm1765_vm2 = vweird.f32 %v3317_v20 }
 0x2d6   :  { %v1702_v41 = vsub.f32 1.0, %v1701_v50  ;;  %v1746_v63 = vmul.f32 %v3335_v2, %v3313_v0  ;;  %vm1751_vm1 = vweird.f32 %v3335_v2  ;;  %v1694_v27 = vand.u32 2147483647, %v3311_v26  ;;  %vm3418_vm4 = vmor %vm1690_vm12, %vm1691_vm13 }
 0x2d7   :  { %v1658_v29 = vmul.f32 %v3315_v28, %v1657_v57  ;;  %v1687_v6 = vsub.f32 1.0, %v1686_v46  ;;  %vm3426_vm6 = vmor %vm1750_vm0, %vm1751_vm1  ;;  %vm3430_vm7 = vcmp.eq.f32.partialorder %v1709_v58, 8.507059e+37  ;;  %v1754_v26 = vand.u32 2147483647, %v3313_v0 }
 0x2d8   :  { %v1703_v54 = vmul.f32 %v3319_v9, %v1702_v41  ;;  %v1747_v36 = vsub.f32 1.0, %v1746_v63  ;;  %v1769_v45 = vand.u32 2147483647, %v3317_v20  ;;  %v1697_v50 = vor.u32 1.1754944e-38, %v1696_v47 }
 0x2d9   :  { %v3338_v56 = vpop.eup %2132  ;;  %v3367_v14 = vadd.f32 %v3315_v28, %v1658_v29  ;;  %v1688_v35 = vmul.f32 %v3333_v25, %v1687_v6  ;;  %v1726_v44 = vand.u32 2147483648, %v3323_v1  ;;  %v1724_v17 = vand.u32 2147483647, %v3323_v1 }
 0x2da   :  { %v3340_v32 = vpop.eup %2134  ;;  %v1761_v38 = vmul.f32 %v3338_v56, %v3317_v20  ;;  %v1704_v60 = vadd.f32 %v3319_v9, %v1703_v54  ;;  %v1748_v52 = vmul.f32 %v3335_v2, %v1747_v36  ;;  %vm1766_vm3 = vweird.f32 %v3338_v56 }
 0x2db   :  { %v1716_v43 = vmul.f32 %v3340_v32, %v3323_v1  ;;  %v1663_v61 = vsel %vm3372_vm9, %v3315_v28, %v3367_v14  ;;  %v1689_v33 = vadd.f32 %v3333_v25, %v1688_v35  ;;  %vm1721_vm5 = vweird.f32 %v3340_v32  ;;  %vm3442_vm8 = vmor %vm1765_vm2, %vm1766_vm3 }
 0x2dc   :  { %v1762_v39 = vsub.f32 1.0, %v1761_v38  ;;  %v1708_v7 = vsel %vm3377_vm10, %v3319_v9, %v1704_v60  ;;  %v1749_v10 = vadd.f32 %v3335_v2, %v1748_v52  ;;  %vm3453_vm9 = vmor %vm1720_vm14, %vm1721_vm5  ;;  %vm1695_vm10 = vcmp.eq.f32.partialorder %v1694_v27, 8.507059e+37 }
 0x2dd   :  { %v1717_v15 = vsub.f32 1.0, %v1716_v43  ;;  %v1693_v20 = vsel %vm3418_vm4, %v3333_v25, %v1689_v33  ;;  %v1772_v29 = vor.u32 1.1754944e-38, %v1771_v24  ;;  %v1713_v46 = vsel %vm3430_vm7, %v1712_v3, %v1708_v7 }
 0x2de   :  { %v1763_v21 = vmul.f32 %v3338_v56, %v1762_v39  ;;  %v1753_v54 = vsel %vm3426_vm6, %v3335_v2, %v1749_v10  ;;  %vm1770_vm12 = vcmp.eq.f32.partialorder %v1769_v45, 8.507059e+37  ;;  %v1727_v25 = vor.u32 1.1754944e-38, %v1726_v44 }
 0x2df   :  { %v1718_v37 = vmul.f32 %v3340_v32, %v1717_v15  ;;  %v1698_v1 = vsel %vm1695_vm10, %v1697_v50, %v1693_v20  ;;  %vm1725_vm14 = vcmp.eq.f32.partialorder %v1724_v17, 8.507059e+37  ;;  %v1668_v53 = vsel %vm3406_vm15, %v1667_v48, %v1663_v61 }
 0x2e0   :  { %v1764_v9 = vadd.f32 %v3338_v56, %v1763_v21  ;;  %v1784_v14 = vrot.slane %v1698_v1, 6  ;;  %vm1790_vm2 = vcmask 1040384   ;;  %vm1792_vm3 = vcmask 1042434  }
 0x2e1   :  { %v1719_v0 = vadd.f32 %v3340_v32, %v1718_v37  ;;  %vm1794_vm5 = vcmask 1041408   ;;  %vm1796_vm15 = vcmask 1044484   ;;  %vm1798_vm6 = vcmask 1046534  }
 0x2e2   :  { %v1768_v42 = vsel %vm3442_vm8, %v3338_v56, %v1764_v9  ;;  %vm1800_vm7 = vcmask 1045508   ;;  %vm1802_vm8 = vcmask 1043456  }
 0x2e3   :  { %v1723_v40 = vsel %vm3453_vm9, %v3340_v32, %v1719_v0  ;;  %v1773_v6 = vsel %vm1770_vm12, %v1772_v29, %v1768_v42 }
 0x2e4   :  { %v1728_v34 = vsel %vm1725_vm14, %v1727_v25, %v1723_v40 }
 0x2e5   :  { %v1786_v49 = vrot.slane %v1728_v34, 4 }
 0x2f9   :  { %v1580_v51 = vpop.f32.mrf.mxu3 }
 0x2fa   :  { %v1581_v11 = vadd.f32 %v1580_v51, %v1074_v13  ;;  %v1679_v13 = vand.u32 2147483647, %v3300_v30 }
 0x2fc   :  { %v2091_v23 = vmul.f32 -1.442695, %v1581_v11  ;;  %vm3392_vm11 = vcmp.eq.f32.partialorder %v1679_v13, 8.507059e+37  ;;  %v1785_v13 = vrot.slane %v1713_v46, 5 }
 0x2fd   :  { %v1683_v57 = vsel %vm3392_vm11, %v1682_v12, %v1678_v55  ;;  %vm1755_vm11 = vcmp.eq.f32.partialorder %v1754_v26, 8.507059e+37 }
 0x2fe   :  { %2136 = vpow2.f32 %v2091_v23  ;;  %v1757_v23 = vor.u32 1.1754944e-38, %v1756_v59  ;;  %v1783_v56 = vrot.slane %v1683_v57, 7  ;;  %v1793_v18 = vsel %vm1792_vm3, %v1784_v14, %v1785_v13 }
 0x300   :  { %v1758_v22 = vsel %vm1755_vm11, %v1757_v23, %v1753_v54  ;;  %v1791_v15 = vsel %vm1790_vm2, %v1668_v53, %v1783_v56 }
 0x301   :  { %v1788_v60 = vrot.slane %v1758_v22, 2  ;;  %v1795_v55 = vsel %vm1794_vm5, %v1791_v15, %v1793_v18 }
 0x304   :  { %v2137_v62 = vpop.eup %2136 }
 0x305   :  { %v3382_v5 = vadd.f32 1.0, %v2137_v62  ;;  %v1789_v62 = vrot.slane %v1773_v6, 1 }
 0x307   :  { %2138 = vrcp.f32 %v3382_v5  ;;  %v1741_v38 = vand.u32 2147483648, %v3382_v5  ;;  %v1739_v2 = vand.u32 2147483647, %v3382_v5  ;;  %vm1735_vm0 = vweird.f32 %v3382_v5 }
 0x308   :  { %v1799_v48 = vsel %vm1798_vm6, %v1788_v60, %v1789_v62 }
 0x309   :  { %v1742_v36 = vor.u32 1.1754944e-38, %v1741_v38  ;;  %vm1740_vm4 = vcmp.eq.f32.partialorder %v1739_v2, 8.507059e+37 }
 0x30d   :  { %v2139_v16 = vpop.eup %2138 }
 0x30e   :  { %v1731_v41 = vmul.f32 %v2139_v16, %v3382_v5  ;;  %vm1736_vm13 = vweird.f32 %v2139_v16 }
 0x30f   :  { %vm1737_vm1 = vmor %vm1735_vm0, %vm1736_vm13 }
 0x310   :  { %v1732_v63 = vsub.f32 1.0, %v1731_v41 }
 0x312   :  { %v1733_v43 = vmul.f32 %v2139_v16, %v1732_v63 }
 0x314   :  { %v1734_v31 = vadd.f32 %v2139_v16, %v1733_v43 }
 0x316   :  { %v1738_v32 = vsel %vm1737_vm1, %v2139_v16, %v1734_v31 }
 0x317   :  { %v1743_v12 = vsel %vm1740_vm4, %v1742_v36, %v1738_v32 }
 0x318   :  { %v1787_v39 = vrot.slane %v1743_v12, 3 }
 0x31a   :  { %v1797_v5 = vsel %vm1796_vm15, %v1786_v49, %v1787_v39 }
 0x31b   :  { %v1801_v35 = vsel %vm1800_vm7, %v1797_v5, %v1799_v48 }
 0x31c   :  { %v1803_v3 = vsel %vm1802_vm8, %v1795_v55, %v1801_v35 }
 0x31d   :  { %1805 = vst [vmem:[#allocation3] sm:$0xff] %v1803_v3 }
 0x31e   :  { %1816 = dma.vmem_to_hbm [thread:$0]  %s1812_s27, 128, %s1814_s3, [#allocation4]  }
 0x31f   :  { %2165 = dma.done.wait [#allocation4], 128  }
 0x320   :  { %2166 = vsyncadd [#allocation4], 4294967168 }
 0x321   :  { %1821 = vsyncpa [#allocation4], 1 }

</bundles_post_ra>
